<compile_context>
chip_gen: v7x
topology: tpu7x:2x2x1
jax: 0.10.0
libtpu: 0.0.40
codegen_flags: <defaults>
</compile_context>

<pallas_src>
import jax
import jax.numpy as jnp
from jax.experimental import pallas as pl
from jax.experimental.pallas import tpu as pltpu

MARGIN = 1.0
EPS = 1e-6          # matches torch.nn.functional.pairwise_distance default eps

B = 256             # batch size (rows of anchor/positive/negative)
D_IN = 128          # synthetic feature width = MXU contraction depth
D_EMB = 384         # MiniLM-L6-v2 embedding width; multiple of 128 (lane-dense)


def contextual_tmn_kernel(x_ref, w_ref, out_ref):
    # TODO(synk): the pretrained SentenceTransformer (tokenization + transformer
    # stack over raw strings) has no Pallas equivalent; a deterministic linear
    # encoder (x @ W) stands in for it.
    a = x_ref[0]        # (TILE_B, D_IN) bf16
    p = x_ref[1]
    n = x_ref[2]

    # a_emb - p_emb == (a - p) @ W: form both differences directly in bf16
    # (no f32 intermediate, no separate cast pass), stack them, and issue ONE
    # MXU matmul with bf16 operands / f32 accumulation.
    diff = jnp.concatenate([a - p, a - n], axis=0)                    # (2*TILE_B, D_IN) bf16
    proj = jnp.dot(diff, w_ref[...],
                   preferred_element_type=jnp.float32)                # (2*TILE_B, D_EMB) f32

    # PyTorch pairwise_distance: ||x1 - x2 + eps||_2 — eps added elementwise to
    # the (projected) embedding difference. D_EMB is exact (no padded lanes).
    shifted = proj + EPS
    d = jnp.sqrt(jnp.sum(shifted * shifted, axis=-1, keepdims=True))  # (2*TILE_B, 1)

    half = d.shape[0] // 2
    # TripletMarginLoss(margin=1.0): per-row hinge, partial sum for this tile.
    per_row = jnp.maximum(d[:half] - d[half:] + MARGIN, 0.0)          # (TILE_B, 1)
    partial = jnp.sum(per_row)

    # (8,128)-aligned partial-sum tile -> unmasked full-tile store (one vreg).
    # The wrapper reads row 0 of each block and applies the 1/B mean.
    out_ref[...] = jnp.full(out_ref.shape, partial, dtype=jnp.float32)


def _num_grid_steps(batch):
    # v7x has 2 TensorCores per chip: give each core one tile. Single-TC chips
    # (v5e/v6e) fuse to one grid step to avoid per-step fixed overhead.
    try:
        kind = jax.devices()[0].device_kind.lower()
        steps = 2 if ("v7" in kind or "7x" in kind) else 1
    except Exception:
        steps = 1
    if batch % steps != 0 or (batch // steps) % 8 != 0:
        steps = 1
    return steps


def contextual_tmn_forward(apn_bf16, w_bf16):
    """apn_bf16: [3, B, D_IN] bf16 (anchor/positive/negative stacked);
    w_bf16: [D_IN, D_EMB] bf16. Returns scalar f32 triplet-margin loss."""
    _, b, d_in = apn_bf16.shape
    d_emb = w_bf16.shape[1]
    num_steps = _num_grid_steps(b)
    tile_b = b // num_steps
    if b != num_steps * tile_b or tile_b % 8 != 0:
        raise ValueError(f"batch {b} not tileable into {num_steps} aligned tiles")

    partials = pl.pallas_call(
        contextual_tmn_kernel,
        out_shape=jax.ShapeDtypeStruct((num_steps * 8, 128), jnp.float32),
        grid=(num_steps,),
        in_specs=[
            # One stacked bf16 block per step -> single DMA descriptor.
            pl.BlockSpec((3, tile_b, d_in), lambda i: (0, i, 0)),
            # W stays VMEM-resident across steps (constant index_map).
            pl.BlockSpec((d_in, d_emb), lambda i: (0, 0)),
        ],
        out_specs=pl.BlockSpec((8, 128), lambda i: (i, 0)),
        compiler_params=pltpu.CompilerParams(
            dimension_semantics=("parallel",)),
    )(apn_bf16, w_bf16)
    # reduction='mean': one partial per block lives at row i*8, col 0.
    return jnp.sum(partials[::8, 0]) * (1.0 / b)


def reference_forward(apn_bf16, w_bf16):
    # Same math (PyTorch TripletMarginLoss semantics) with the same bf16-operand
    # / f32-accumulate encoder matmul, expressed in plain JAX.
    a, p, n = apn_bf16[0], apn_bf16[1], apn_bf16[2]
    e_ap = jnp.dot(a - p, w_bf16, preferred_element_type=jnp.float32) + EPS
    e_an = jnp.dot(a - n, w_bf16, preferred_element_type=jnp.float32) + EPS
    d_ap = jnp.sqrt(jnp.sum(e_ap * e_ap, axis=-1))
    d_an = jnp.sqrt(jnp.sum(e_an * e_an, axis=-1))
    return jnp.mean(jnp.maximum(d_ap - d_an + MARGIN, 0.0))


if __name__ == "__main__":
    key = jax.random.PRNGKey(0)
    k_a, k_p, k_n, k_w = jax.random.split(key, 4)

    anchor = jax.random.normal(k_a, (B, D_IN), dtype=jnp.float32)
    positive = jax.random.normal(k_p, (B, D_IN), dtype=jnp.float32)
    negative = jax.random.normal(k_n, (B, D_IN), dtype=jnp.float32)

    # Stacked bf16 inputs: halve input HBM bytes (kernel is bandwidth/overhead
    # bound) and collapse three per-step DMAs into one.
    apn = jnp.stack([anchor, positive, negative], axis=0).astype(jnp.bfloat16)
    # Deterministic "encoder" weights (synthetic stand-in, not a checkpoint load),
    # stored in bf16; matmul accumulation stays f32.
    w = (jax.random.normal(k_w, (D_IN, D_EMB), dtype=jnp.float32) * 0.1).astype(jnp.bfloat16)

    loss = contextual_tmn_forward(apn, w)
    loss = jax.block_until_ready(loss)

    ref = reference_forward(apn, w)
    assert jnp.allclose(loss, ref, rtol=2e-3, atol=2e-3), (loss, ref)

    print("KERNEL_OK")
</pallas_src>

<mosaic_0001>
module attributes {stable_mosaic.version = 11 : i64} {
  func.func @contextual_tmn_kernel(%arg0: i32, %arg1: memref<3x256x128xbf16, #tpu.memory_space<vmem>>, %arg2: memref<128x384xbf16, #tpu.memory_space<vmem>>, %arg3: memref<8x128xf32, #tpu.memory_space<vmem>>) attributes {dimension_semantics = [#tpu.dimension_semantics<parallel>], iteration_bounds = array<i64: 1>, scalar_prefetch = 0 : i64, scratch_operands = 0 : i64, tpu.core_type = #tpu.core_type<tc>, window_params = [{transform_indices = @transform_0, window_bounds = array<i64: 3, 256, 128>}, {pipeline_mode = #tpu.pipeline_mode<synchronous>, transform_indices = @transform_1, window_bounds = array<i64: 128, 384>}, {transform_indices = @transform_2, window_bounds = array<i64: 8, 128>}]} {
    %c0 = arith.constant 0 : index
    %c0_0 = arith.constant 0 : index
    %c0_1 = arith.constant 0 : index
    %0 = vector.load %arg1[%c0, %c0_0, %c0_1] : memref<3x256x128xbf16, #tpu.memory_space<vmem>>, vector<1x256x128xbf16>
    %1 = vector.shape_cast %0 : vector<1x256x128xbf16> to vector<256x128xbf16>
    %c1 = arith.constant 1 : index
    %c0_2 = arith.constant 0 : index
    %c0_3 = arith.constant 0 : index
    %2 = vector.load %arg1[%c1, %c0_2, %c0_3] : memref<3x256x128xbf16, #tpu.memory_space<vmem>>, vector<1x256x128xbf16>
    %3 = vector.shape_cast %2 : vector<1x256x128xbf16> to vector<256x128xbf16>
    %c2 = arith.constant 2 : index
    %c0_4 = arith.constant 0 : index
    %c0_5 = arith.constant 0 : index
    %4 = vector.load %arg1[%c2, %c0_4, %c0_5] : memref<3x256x128xbf16, #tpu.memory_space<vmem>>, vector<1x256x128xbf16>
    %5 = vector.shape_cast %4 : vector<1x256x128xbf16> to vector<256x128xbf16>
    %6 = arith.subf %1, %3 : vector<256x128xbf16>
    %7 = arith.subf %1, %5 : vector<256x128xbf16>
    %8 = tpu.concatenate %6, %7 in 0 : vector<256x128xbf16>, vector<256x128xbf16> -> vector<512x128xbf16>
    %c0_6 = arith.constant 0 : index
    %c0_7 = arith.constant 0 : index
    %9 = vector.load %arg2[%c0_6, %c0_7] : memref<128x384xbf16, #tpu.memory_space<vmem>>, vector<128x384xbf16>
    %cst = arith.constant dense<0.000000e+00> : vector<512x384xf32>
    %10 = tpu.matmul %8, %9, %cst {dimension_numbers = #tpu.dot_dimension_numbers<[1], [0], [0], [1], [0, 0, 1, 1], [], []>} : vector<512x128xbf16>, vector<128x384xbf16>, vector<512x384xf32> -> vector<512x384xf32>
    %cst_8 = arith.constant 9.99999997E-7 : f32
    %11 = vector.broadcast %cst_8 : f32 to vector<512x384xf32>
    %12 = arith.addf %10, %11 : vector<512x384xf32>
    %13 = arith.mulf %12, %12 : vector<512x384xf32>
    %cst_9 = arith.constant dense<0.000000e+00> : vector<512xf32>
    %14 = vector.multi_reduction <add>, %13, %cst_9 [1] : vector<512x384xf32> to vector<512xf32>
    %15 = vector.shape_cast %14 : vector<512xf32> to vector<512x1xf32>
    %16 = math.sqrt %15 : vector<512x1xf32>
    %17 = vector.extract_strided_slice %16 {offsets = [0, 0], sizes = [256, 1], strides = [1, 1]} : vector<512x1xf32> to vector<256x1xf32>
    %18 = vector.extract_strided_slice %16 {offsets = [256, 0], sizes = [256, 1], strides = [1, 1]} : vector<512x1xf32> to vector<256x1xf32>
    %19 = arith.subf %17, %18 : vector<256x1xf32>
    %cst_10 = arith.constant 1.000000e+00 : f32
    %20 = vector.broadcast %cst_10 : f32 to vector<256x1xf32>
    %21 = arith.addf %19, %20 : vector<256x1xf32>
    %cst_11 = arith.constant 0.000000e+00 : f32
    %22 = vector.broadcast %cst_11 : f32 to vector<256x1xf32>
    %23 = arith.maximumf %21, %22 : vector<256x1xf32>
    %24 = vector.shape_cast %23 : vector<256x1xf32> to vector<1x256x1xf32>
    %cst_12 = arith.constant dense<0.000000e+00> : vector<1xf32>
    %25 = vector.multi_reduction <add>, %24, %cst_12 [1, 2] : vector<1x256x1xf32> to vector<1xf32>
    %26 = vector.shape_cast %25 : vector<1xf32> to vector<1x1x1xf32>
    %27 = vector.extract %26[0, 0, 0] : f32 from vector<1x1x1xf32>
    %28 = vector.broadcast %27 : f32 to vector<8x128xf32>
    %c0_13 = arith.constant 0 : index
    %c0_14 = arith.constant 0 : index
    %29 = vector.load %arg3[%c0_13, %c0_14] : memref<8x128xf32, #tpu.memory_space<vmem>>, vector<8x128xf32>
    tpu.vector_store %arg3[%c0_13, %c0_14], %28 {strides = array<i32>} : memref<8x128xf32, #tpu.memory_space<vmem>>, vector<8x128xf32>,
    return
  }
  func.func @transform_0(%arg0: i32) -> (i32, i32, i32) {
    %c0_i32 = arith.constant 0 : i32
    %c0_i32_0 = arith.constant 0 : i32
    %c0_i32_1 = arith.constant 0 : i32
    return %c0_i32, %arg0, %c0_i32_0 : i32, i32, i32
  }
  func.func @transform_1(%arg0: i32) -> (i32, i32) {
    %c0_i32 = arith.constant 0 : i32
    %c0_i32_0 = arith.constant 0 : i32
    %c0_i32_1 = arith.constant 0 : i32
    return %c0_i32, %c0_i32_0 : i32, i32
  }
  func.func @transform_2(%arg0: i32) -> (i32, i32) {
    %c0_i32 = arith.constant 0 : i32
    %c0_i32_0 = arith.constant 0 : i32
    return %arg0, %c0_i32 : i32, i32
  }
}

</mosaic_0001>

<bundles_post_ra>
// kernel: tpu_custom_call.1
= control target key start
LH: loop header
LB: loop body
LE: loop exit
PB: predicated region body
PF: predicated region fallthrough
CT: control target
= control target key end

     0   :  { %7 = vsyncpa [#allocation3], 0  ;;  %s4145_s0 = inlined_call_operand.hbm [shape: bf16[3,256,128], index: 0, kind: input, shape index: {}]   ;;  %s4146_s1 = inlined_call_operand.hbm [shape: bf16[128,384], index: 1, kind: input, shape index: {}]   ;;  %s4147_s2 = inlined_call_operand.hbm [shape: f32[8,128], index: 2, kind: output, shape index: {}]  }
   0x1   :  { %8 = vsyncpa [#allocation6], 0 }
   0x2   :  { %9 = vsyncpa [#allocation4], 0  ;;  %s2714_s9 = smov [#allocation2]   ;;  %s2642_s13 = scalar_lea.hbm %s4145_s0, 6144 }
   0x3   :  { %s15_s10 = sshll.u32 %s2714_s9, 4  ;;  %p2643_p0 = scmp.ne.s32.totalorder %s4145_s0, %s2642_s13  ;;  %s16_s10 = int_to_ptr.vmem [resolvable:$true] %s15_s10 }
   0x4   :  { %p2646_p1 = scmp.lt.u32.totalorder %s2642_s13, %s4145_s0 }
   0x6   :  { %p2648_p2 = pnand %p2646_p1, %p2643_p0 }
   0x8   :  { %2651 = shalt.err (!%p2648_p2)
}
   0x9   :  { %s2652_s18 = scalar_lea.vmem %s16_s10, 6144  ;;  %p2657_p4 = scmp.lt.s32.totalorder %s16_s10, %s16_s10 }
   0xa   :  { %p2653_p3 = scmp.ne.s32.totalorder %s16_s10, %s2652_s18  ;;  %p2658_p5 = scmp.lt.s32.totalorder %s2652_s18, %s2652_s18 }
   0xc   :  { %p2659_p6 = por %p2658_p5, %p2657_p4 }
   0xe   :  { %p2660_p7 = pnand %p2659_p6, %p2653_p3 }
  0x10   :  { %2663 = shalt.err (!%p2660_p7)
}
  0x11   :  { %s2715_s19 = smov 64   ;;  %s2716_s20 = smov 4  }
  0x12   :  { %21 = dma.hbm_to_vmem [thread:$0]  %s4145_s0, 6144, %s16_s10, [#allocation3], %s2715_s19, %s2715_s19, %s2716_s20  }
  0x13   :  { %s2717_s23 = smov [#allocation5]   ;;  %s2664_s27 = scalar_lea.hbm %s4146_s1, 3072 }
  0x14   :  { %s27_s24 = sshll.u32 %s2717_s23, 4  ;;  %p2665_p8 = scmp.ne.s32.totalorder %s4146_s1, %s2664_s27  ;;  %s28_s24 = int_to_ptr.vmem [resolvable:$true] %s27_s24 }
  0x15   :  { %p2668_p9 = scmp.lt.u32.totalorder %s2664_s27, %s4146_s1 }
  0x17   :  { %p2670_p10 = pnand %p2668_p9, %p2665_p8 }
  0x19   :  { %2673 = shalt.err (!%p2670_p10)
}
  0x1a   :  { %s2674_s4 = scalar_lea.vmem %s28_s24, 3072  ;;  %p2679_p12 = scmp.lt.s32.totalorder %s28_s24, %s28_s24 }
  0x1b   :  { %p2675_p11 = scmp.ne.s32.totalorder %s28_s24, %s2674_s4  ;;  %p2680_p13 = scmp.lt.s32.totalorder %s2674_s4, %s2674_s4 }
  0x1d   :  { %p2681_p0 = por %p2680_p13, %p2679_p12 }
  0x1f   :  { %p2682_p1 = pnand %p2681_p0, %p2675_p11 }
  0x21   :  { %2685 = shalt.err (!%p2682_p1)
}
  0x22   :  { %s2718_s0 = smov 192   ;;  %s2719_s5 = smov 12  }
  0x23   :  { %33 = dma.hbm_to_vmem [thread:$0]  %s4146_s1, 3072, %s28_s24, [#allocation6], %s2718_s0, %s2718_s0, %s2719_s5  }
  0x24   :  { %2708 = dma.done.wait [#allocation3], 6144  }
  0x25   :  { %2709 = vsyncadd [#allocation3], 4294961152 }
  0x26   :  { %2710 = dma.done.wait [#allocation6], 3072  }
  0x27   :  { %2711 = vsyncadd [#allocation6], 4294964224  ;;  %v2720_v0 = vmov 0   ;;  %v2482_v1 = vld [vmem:[#allocation5 + $0x4] ss:$12 sps:$4 sm:$0xff]   ;;  %s2721_s1 = smov [#allocation7]  }
  0x28   :  { %587 = vmatprep.mubr.bf16.mxu0 %v2720_v0  ;;  %827 = vmatprep.mubr.bf16.mxu1 %v2720_v0  ;;  %v2484_v2 = vld [vmem:[#allocation5] ss:$12 sps:$4 sm:$0xff]   ;;  %v2485_v3 = vld [vmem:[#allocation5 + $0x1c] ss:$12 sps:$4 sm:$0xff]   ;;  %v2487_v4 = vld [vmem:[#allocation5 + $0x18] ss:$12 sps:$4 sm:$0xff]  }
  0x29   :  { %555 = vmatprep.subr.bf16.mxu0 %v2482_v1  ;;  %2456 = vmatprep.subr.bf16.mxu1 %v2482_v1  ;;  %v2488_v5 = vld [vmem:[#allocation5 + $0x34] ss:$12 sps:$4 sm:$0xff]   ;;  %v2490_v6 = vld [vmem:[#allocation5 + $0x30] ss:$12 sps:$4 sm:$0xff]   ;;  %v2491_v7 = vld [vmem:[#allocation5 + $0x4c] ss:$12 sps:$4 sm:$0xff]  }
  0x2a   :  { %556 = vmatpush1.bf16.msra.mxu0 %v2484_v2  ;;  %2464 = vmatpush1.bf16.msra.mxu1 %v2484_v2  ;;  %v2493_v8 = vld [vmem:[#allocation5 + $0x48] ss:$12 sps:$4 sm:$0xff]   ;;  %v2494_v9 = vld [vmem:[#allocation5 + $0x64] ss:$12 sps:$4 sm:$0xff]   ;;  %v2496_v10 = vld [vmem:[#allocation5 + $0x60] ss:$12 sps:$4 sm:$0xff]  }
  0x2b   :  { %557 = vmatprep.subr.bf16.mxu0 %v2485_v3  ;;  %2457 = vmatprep.subr.bf16.mxu1 %v2485_v3  ;;  %v2497_v11 = vld [vmem:[#allocation5 + $0x7c] ss:$12 sps:$4 sm:$0xff]   ;;  %v2499_v12 = vld [vmem:[#allocation5 + $0x78] ss:$12 sps:$4 sm:$0xff]   ;;  %v2500_v13 = vld [vmem:[#allocation5 + $0x94] ss:$12 sps:$4 sm:$0xff]  }
  0x2c   :  { %v2502_v14 = vld [vmem:[#allocation5 + $0x90] ss:$12 sps:$4 sm:$0xff]   ;;  %v2763_v15 = vld [vmem:[#allocation2] sm:$0xf]  ;;  %v2765_v16 = vld [vmem:[#allocation2 + $0x4] sm:$0xf] }
  0x2d   :  { %v74_v17 = vld [vmem:[#allocation2 + $0x80] sm:$0xf]  ;;  %v75_v18 = vld [vmem:[#allocation2 + $0x84] sm:$0xf]  ;;  %v2503_v23 = vld [vmem:[#allocation5 + $0xac] ss:$12 sps:$4 sm:$0xff]  }
  0x2e   :  { %558 = vmatpush1.bf16.msra.mxu0 %v2487_v4  ;;  %2465 = vmatpush1.bf16.msra.mxu1 %v2487_v4  ;;  %v2767_v19 = vld [vmem:[#allocation2 + $0x40] sm:$0xf]  ;;  %v2769_v20 = vld [vmem:[#allocation2 + $0x44] sm:$0xf]  ;;  %v139_v24 = vsub.bf16 %v2763_v15, %v74_v17  ;;  %v140_v25 = vsub.bf16 %v2765_v16, %v75_v18  ;;  %v2505_v28 = vld [vmem:[#allocation5 + $0xa8] ss:$12 sps:$4 sm:$0xff]  }
  0x2f   :  { %559 = vmatprep.subr.bf16.mxu0 %v2488_v5  ;;  %2458 = vmatprep.subr.bf16.mxu1 %v2488_v5  ;;  %v123_v21 = vld [vmem:[#allocation2 + $0x140] sm:$0xf]  ;;  %v124_v22 = vld [vmem:[#allocation2 + $0x144] sm:$0xf]  ;;  %v2506_v29 = vld [vmem:[#allocation5 + $0x8] ss:$12 sps:$4 sm:$0xff]  }
  0x30   :  { %v187_v26 = vsub.bf16 %v2767_v19, %v123_v21  ;;  %v188_v27 = vsub.bf16 %v2769_v20, %v124_v22  ;;  %v2775_v30 = vld [vmem:[#allocation2 + $0x8] sm:$0xf]  ;;  %v2777_v32 = vld [vmem:[#allocation2 + $0xc] sm:$0xf]  ;;  %v2783_v37 = vcombine.low %v139_v24, %v140_v25  ;;  %v2787_v41 = vld [vmem:[#allocation2 + $0x10] sm:$0xf] }
  0x31   :  { %v76_v31 = vld [vmem:[#allocation2 + $0x88] sm:$0xf]  ;;  %v77_v33 = vld [vmem:[#allocation2 + $0x8c] sm:$0xf]  ;;  %v2789_v42 = vld [vmem:[#allocation2 + $0x14] sm:$0xf] }
  0x32   :  { %560 = vmatpush1.bf16.msra.mxu0 %v2490_v6  ;;  %2466 = vmatpush1.bf16.msra.mxu1 %v2490_v6  ;;  %v2779_v34 = vld [vmem:[#allocation2 + $0x48] sm:$0xf]  ;;  %v2781_v35 = vld [vmem:[#allocation2 + $0x4c] sm:$0xf]  ;;  %v2785_v38 = vcombine.low %v187_v26, %v188_v27  ;;  %v78_v43 = vld [vmem:[#allocation2 + $0x90] sm:$0xf]  ;;  %v141_v46 = vsub.bf16 %v2775_v30, %v76_v31  ;;  %v142_v50 = vsub.bf16 %v2777_v32, %v77_v33 }
  0x33   :  { %561 = vmatprep.subr.bf16.mxu0 %v2491_v7  ;;  %2459 = vmatprep.subr.bf16.mxu1 %v2491_v7  ;;  %v125_v36 = vld [vmem:[#allocation2 + $0x148] sm:$0xf]  ;;  %v126_v39 = vld [vmem:[#allocation2 + $0x14c] sm:$0xf]  ;;  %v79_v44 = vld [vmem:[#allocation2 + $0x94] sm:$0xf]  ;;  %v143_v53 = vsub.bf16 %v2787_v41, %v78_v43 }
  0x34   :  { %v2507_v40 = vld [vmem:[#allocation5 + $0x20] ss:$12 sps:$4 sm:$0xff]   ;;  %v2791_v45 = vld [vmem:[#allocation2 + $0x50] sm:$0xf]  ;;  %v2794_v47 = vld [vmem:[#allocation2 + $0x54] sm:$0xf]  ;;  %v189_v51 = vsub.bf16 %v2779_v34, %v125_v36  ;;  %v190_v52 = vsub.bf16 %v2781_v35, %v126_v39  ;;  %v144_v54 = vsub.bf16 %v2789_v42, %v79_v44  ;;  %v2819_v1 = vcombine.low %v141_v46, %v142_v50 }
  0x35   :  { %v127_v48 = vld [vmem:[#allocation2 + $0x150] sm:$0xf]  ;;  %v128_v49 = vld [vmem:[#allocation2 + $0x154] sm:$0xf]  ;;  %v2508_v55 = vld [vmem:[#allocation5 + $0x38] ss:$12 sps:$4 sm:$0xff]  }
  0x36   :  { %562 = vmatpush1.bf16.msra.mxu0 %v2493_v8  ;;  %2467 = vmatpush1.bf16.msra.mxu1 %v2493_v8  ;;  %v191_v56 = vsub.bf16 %v2791_v45, %v127_v48  ;;  %v192_v57 = vsub.bf16 %v2794_v47, %v128_v49  ;;  %v2807_v58 = vld [vmem:[#allocation2 + $0x18] sm:$0xf]  ;;  %v2809_v59 = vld [vmem:[#allocation2 + $0x1c] sm:$0xf]  ;;  %v2821_v2 = vcombine.low %v189_v51, %v190_v52  ;;  %v2841_v17 = vld [vmem:[#allocation2 + $0x60] sm:$0xf] }
  0x37   :  { %563 = vmatprep.subr.bf16.mxu0 %v2494_v9  ;;  %2460 = vmatprep.subr.bf16.mxu1 %v2494_v9  ;;  %v2811_v60 = vld [vmem:[#allocation2 + $0x98] sm:$0xf]  ;;  %v2813_v61 = vld [vmem:[#allocation2 + $0x9c] sm:$0xf]  ;;  %v2827_v5 = vcombine.low %v143_v53, %v144_v54  ;;  %v2843_v18 = vld [vmem:[#allocation2 + $0x64] sm:$0xf] }
  0x38   :  { %v2815_v62 = vld [vmem:[#allocation2 + $0x58] sm:$0xf]  ;;  %v2823_v3 = vld [vmem:[#allocation2 + $0x5c] sm:$0xf]  ;;  %v2831_v7 = vcombine.low %v191_v56, %v192_v57  ;;  %v145_v8 = vsub.bf16 %v2807_v58, %v2811_v60  ;;  %v146_v9 = vsub.bf16 %v2809_v59, %v2813_v61  ;;  %v94_v25 = vld [vmem:[#allocation2 + $0xd0] sm:$0xf] }
  0x39   :  { %v2817_v63 = vld [vmem:[#allocation2 + $0x158] sm:$0xf]  ;;  %v2825_v4 = vld [vmem:[#allocation2 + $0x15c] sm:$0xf]  ;;  %v95_v26 = vld [vmem:[#allocation2 + $0xd4] sm:$0xf] }
  0x3a   :  { %564 = vmatpush1.bf16.msra.mxu0 %v2496_v10  ;;  %2468 = vmatpush1.bf16.msra.mxu1 %v2496_v10  ;;  %v2829_v6 = vld [vmem:[#allocation5 + $0x50] ss:$12 sps:$4 sm:$0xff]   ;;  %v193_v10 = vsub.bf16 %v2815_v62, %v2817_v63  ;;  %v2850_v27 = vld [vmem:[#allocation2 + $0x68] sm:$0xf]  ;;  %v96_v33 = vld [vmem:[#allocation2 + $0xd8] sm:$0xf] }
  0x3b   :  { %565 = vmatprep.subr.bf16.mxu0 %v2497_v11  ;;  %2461 = vmatprep.subr.bf16.mxu1 %v2497_v11  ;;  %v90_v11 = vld [vmem:[#allocation2 + $0xc0] sm:$0xf]  ;;  %v2861_v39 = vld [vmem:[#allocation5 + $0x68] ss:$12 sps:$4 sm:$0xff]   ;;  %v2865_v43 = vld [vmem:[#allocation2 + $0x78] sm:$0xf] }
  0x3c   :  { %v155_v21 = vsub.bf16 %v2767_v19, %v90_v11  ;;  %v159_v19 = vsub.bf16 %v2791_v45, %v94_v25  ;;  %v98_v36 = vld [vmem:[#allocation2 + $0xe0] sm:$0xf]  ;;  %v2867_v44 = vld [vmem:[#allocation2 + $0x7c] sm:$0xf]  ;;  %v161_v45 = vsub.bf16 %v2815_v62, %v96_v33  ;;  %v100_v48 = vld [vmem:[#allocation2 + $0xe8] sm:$0xf] }
  0x3d   :  { %v101_v49 = vld [vmem:[#allocation2 + $0xec] sm:$0xf]  ;;  %v163_v52 = vsub.bf16 %v2841_v17, %v98_v36  ;;  %v102_v54 = vld [vmem:[#allocation2 + $0xf0] sm:$0xf]  ;;  %v103_v56 = vld [vmem:[#allocation2 + $0xf4] sm:$0xf] }
  0x3e   :  { %566 = vmatpush1.bf16.msra.mxu0 %v2499_v12  ;;  %2469 = vmatpush1.bf16.msra.mxu1 %v2499_v12  ;;  %v91_v12 = vld [vmem:[#allocation2 + $0xc4] sm:$0xf]  ;;  %v104_v57 = vld [vmem:[#allocation2 + $0xf8] sm:$0xf]  ;;  %v111_v33 = vld [vmem:[#allocation2 + $0x110] sm:$0xf] }
  0x3f   :  { %567 = vmatprep.subr.bf16.mxu0 %v2500_v13  ;;  %2462 = vmatprep.subr.bf16.mxu1 %v2500_v13  ;;  %v92_v13 = vld [vmem:[#allocation2 + $0xc8] sm:$0xf]  ;;  %v156_v22 = vsub.bf16 %v2769_v20, %v91_v12  ;;  %v160_v20 = vsub.bf16 %v2794_v47, %v95_v26  ;;  %v99_v47 = vld [vmem:[#allocation2 + $0xe4] sm:$0xf]  ;;  %v165_v12 = vsub.bf16 %v2850_v27, %v100_v48  ;;  %v112_v48 = vld [vmem:[#allocation2 + $0x114] sm:$0xf] }
  0x40   :  { %v157_v24 = vsub.bf16 %v2779_v34, %v92_v13  ;;  %v97_v34 = vld [vmem:[#allocation2 + $0xdc] sm:$0xf]  ;;  %v164_v53 = vsub.bf16 %v2843_v18, %v99_v47  ;;  %v169_v26 = vsub.bf16 %v2865_v43, %v104_v57  ;;  %v175_v57 = vsub.bf16 %v2787_v41, %v111_v33  ;;  %v2914_v41 = vld [vmem:[#allocation2 + $0x2c] sm:$0xf]  ;;  %s2270_s8 = sshll.u32 %s2721_s1, 4  ;;  %s2271_s8 = int_to_ptr.vmem [resolvable:$true] %s2270_s8 }
  0x41   :  { %v162_v46 = vsub.bf16 %v2823_v3, %v97_v34  ;;  %v2875_v51 = vcombine.low %v159_v19, %v160_v20  ;;  %v109_v19 = vld [vmem:[#allocation2 + $0x108] sm:$0xf]  ;;  %v110_v20 = vld [vmem:[#allocation2 + $0x10c] sm:$0xf]  ;;  %v2890_v34 = vld [vmem:[#allocation2 + $0x20] sm:$0xf]  ;;  %p2691_p3 = scmp.lt.s32.totalorder %s2271_s8, %s2271_s8 }
  0x42   :  { %568 = vmatpush1.bf16.msra.mxu0 %v2502_v14  ;;  %2470 = vmatpush1.bf16.msra.mxu1 %v2502_v14  ;;  %v194_v14 = vsub.bf16 %v2823_v3, %v2825_v4  ;;  %v173_v47 = vsub.bf16 %v2775_v30, %v109_v19  ;;  %v2923_v19 = vld [vmem:[#allocation2 + $0x34] sm:$0xf]  ;;  %v83_v3 = vld [vmem:[#allocation2 + $0xa4] sm:$0xf]  ;;  %v131_v4 = vld [vmem:[#allocation2 + $0x160] sm:$0xf] }
  0x43   :  { %569 = vmatprep.subr.bf16.mxu0 %v2503_v23  ;;  %2463 = vmatprep.subr.bf16.mxu1 %v2503_v23  ;;  %v93_v23 = vld [vmem:[#allocation2 + $0xcc] sm:$0xf]  ;;  %v2880_v11 = vcombine.low %v161_v45, %v162_v46  ;;  %s2686_s10 = scalar_lea.vmem %s2271_s8, 128 }
  0x44   :  { %v158_v31 = vsub.bf16 %v2781_v35, %v93_v23  ;;  %v2869_v35 = vcombine.low %v155_v21, %v156_v22  ;;  %v105_v21 = vld [vmem:[#allocation2 + $0xfc] sm:$0xf]  ;;  %v107_v22 = vld [vmem:[#allocation2 + $0x100] sm:$0xf]  ;;  %v108_v23 = vld [vmem:[#allocation2 + $0x104] sm:$0xf]  ;;  %p2687_p2 = scmp.ne.s32.totalorder %s2271_s8, %s2686_s10  ;;  %p2692_p4 = scmp.lt.s32.totalorder %s2686_s10, %s2686_s10 }
  0x45   :  { %v171_v45 = vsub.bf16 %v2763_v15, %v107_v22  ;;  %v172_v46 = vsub.bf16 %v2765_v16, %v108_v23  ;;  %v117_v15 = vld [vmem:[#allocation2 + $0x128] sm:$0xf]  ;;  %v2511_v16 = vld [vmem:[#allocation5 + $0x80] ss:$12 sps:$4 sm:$0xff]   ;;  %v176_v22 = vsub.bf16 %v2789_v42, %v112_v48  ;;  %v120_v48 = vld [vmem:[#allocation2 + $0x134] sm:$0xf] }
  0x46   :  { %570 = vmatpush1.bf16.msra.mxu0 %v2505_v28  ;;  %2471 = vmatpush1.bf16.msra.mxu1 %v2505_v28  ;;  %v2852_v28 = vld [vmem:[#allocation2 + $0x6c] sm:$0xf]  ;;  %v2873_v50 = vcombine.low %v157_v24, %v158_v31  ;;  %v2885_v24 = vcombine.low %v163_v52, %v164_v53  ;;  %v170_v31 = vsub.bf16 %v2867_v44, %v105_v21  ;;  %v114_v52 = vld [vmem:[#allocation2 + $0x11c] sm:$0xf]  ;;  %v50_v21 = vld [vmem:[#allocation2 + $0x24] sm:$0xf]  ;;  %p2693_p5 = por %p2692_p4, %p2691_p3 }
  0x47   :  { %2376 = vmatprep.subr.bf16.mxu1 %v2506_v29  ;;  %v166_v13 = vsub.bf16 %v2852_v28, %v101_v49  ;;  %v113_v49 = vld [vmem:[#allocation2 + $0x118] sm:$0xf]  ;;  %v2905_v30 = vcombine.low %v171_v45, %v172_v46  ;;  %v118_v23 = vld [vmem:[#allocation2 + $0x12c] sm:$0xf]  ;;  %v119_v46 = vld [vmem:[#allocation2 + $0x130] sm:$0xf] }
  0x48   :  { %p2694_p6 = pnand %p2693_p5, %p2687_p2 }
  0x49   :  { %588 = vmatmul.mubr.bf16.vlgmr.msra.gmra.mrb[0].mxu0 %v2783_v37  ;;  %828 = vmatmul.mubr.bf16.vlgmr.msra.gmra.mrb[0].mxu1 %v2785_v38  ;;  %v2892_v36 = vcombine.low %v165_v12, %v166_v13  ;;  %v115_v12 = vld [vmem:[#allocation2 + $0x120] sm:$0xf]  ;;  %v116_v13 = vld [vmem:[#allocation2 + $0x124] sm:$0xf] }
  0x4a   :  { %2377 = vmatpush3.bf16.msra.mxu1 %v2506_v29  ;;  %597 = vmatprep.mubr.bf16.mxu0 %v2720_v0  ;;  %v2854_v29 = vld [vmem:[#allocation2 + $0x70] sm:$0xf]  ;;  %v180_v42 = vsub.bf16 %v50_v21, %v116_v13  ;;  %v2944_v13 = vcombine.low %v145_v8, %v146_v9  ;;  %v132_v8 = vld [vmem:[#allocation2 + $0x164] sm:$0xf] }
  0x4b   :  { %837 = vmatprep.mubr.bf16.mxu1 %v2720_v0  ;;  %2378 = vmatprep.subr.bf16.mxu1 %v2507_v40  ;;  %v2513_v9 = vld [vmem:[#allocation5 + $0xb0] ss:$12 sps:$4 sm:$0xff]  }
  0x4e   :  { %2379 = vmatpush3.bf16.msra.mxu1 %v2507_v40  ;;  %v2863_v40 = vld [vmem:[#allocation2 + $0x74] sm:$0xf] }
  0x4f   :  { %2380 = vmatprep.subr.bf16.mxu1 %v2508_v55  ;;  %v168_v25 = vsub.bf16 %v2863_v40, %v103_v56  ;;  %v174_v56 = vsub.bf16 %v2777_v32, %v110_v20  ;;  %v2912_v32 = vld [vmem:[#allocation2 + $0x28] sm:$0xf]  ;;  %v2925_v20 = vcombine.low %v175_v57, %v176_v22  ;;  %v184_v57 = vsub.bf16 %v2923_v19, %v120_v48  ;;  %v121_v22 = vld [vmem:[#allocation2 + $0x138] sm:$0xf] }
  0x50   :  { %v181_v45 = vsub.bf16 %v2912_v32, %v117_v15  ;;  %v2954_v15 = vld [vmem:[#allocation2 + $0x3c] sm:$0xf] }
  0x51   :  { %598 = vmatmul.mubr.bf16.gmra.mrb[4].mxu0 %v2819_v1  ;;  %838 = vmatmul.mubr.bf16.gmra.mrb[4].mxu1 %v2821_v2 }
  0x52   :  { %607 = vmatprep.mubr.bf16.mxu0 %v2720_v0  ;;  %847 = vmatprep.mubr.bf16.mxu1 %v2720_v0 }
  0x53   :  { %2381 = vmatpush3.bf16.msra.mxu1 %v2508_v55  ;;  %v167_v55 = vsub.bf16 %v2854_v29, %v102_v54  ;;  %v2900_v54 = vcombine.low %v169_v26, %v170_v31  ;;  %v2918_v26 = vcombine.low %v173_v47, %v174_v56  ;;  %v179_v31 = vsub.bf16 %v2890_v34, %v115_v12  ;;  %v2512_v47 = vld [vmem:[#allocation5 + $0x98] ss:$12 sps:$4 sm:$0xff]  }
  0x54   :  { %2382 = vmatprep.subr.bf16.mxu1 %v2829_v6  ;;  %v182_v56 = vsub.bf16 %v2914_v41, %v118_v23  ;;  %v196_v23 = vsub.bf16 %v2843_v18, %v132_v8 }
  0x55   :  { %v2898_v53 = vcombine.low %v167_v55, %v168_v25  ;;  %v178_v55 = vsub.bf16 %v2809_v59, %v114_v52  ;;  %v2916_v25 = vld [vmem:[#allocation2 + $0x30] sm:$0xf]  ;;  %v2933_v52 = vcombine.low %v179_v31, %v180_v42  ;;  %v85_v42 = vld [vmem:[#allocation2 + $0xac] sm:$0xf] }
  0x56   :  { %v183_v12 = vsub.bf16 %v2916_v25, %v119_v46  ;;  %v2956_v59 = vcombine.low %v181_v45, %v182_v56  ;;  %v133_v45 = vld [vmem:[#allocation2 + $0x168] sm:$0xf]  ;;  %v134_v46 = vld [vmem:[#allocation2 + $0x16c] sm:$0xf] }
  0x57   :  { %2383 = vmatpush3.bf16.msra.mxu1 %v2829_v6  ;;  %v177_v6 = vsub.bf16 %v2807_v58, %v113_v49  ;;  %v2931_v49 = vld [vmem:[#allocation2 + $0x38] sm:$0xf]  ;;  %v197_v18 = vsub.bf16 %v2850_v27, %v133_v45  ;;  %v198_v48 = vsub.bf16 %v2852_v28, %v134_v46 }
  0x58   :  { %2384 = vmatprep.subr.bf16.mxu1 %v2861_v39  ;;  %v2958_v61 = vcombine.low %v183_v12, %v184_v57  ;;  %v185_v58 = vsub.bf16 %v2931_v49, %v121_v22  ;;  %v86_v12 = vld [vmem:[#allocation2 + $0xb0] sm:$0xf]  ;;  %v87_v57 = vld [vmem:[#allocation2 + $0xb4] sm:$0xf] }
  0x59   :  { %608 = vmatmul.mubr.bf16.gmra.mrb[8].mxu0 %v2827_v5  ;;  %848 = vmatmul.mubr.bf16.gmra.mrb[8].mxu1 %v2831_v7  ;;  %v2927_v33 = vcombine.low %v177_v6, %v178_v55  ;;  %v122_v6 = vld [vmem:[#allocation2 + $0x13c] sm:$0xf]  ;;  %v82_v55 = vld [vmem:[#allocation2 + $0xa0] sm:$0xf]  ;;  %v2980_v56 = vcombine.low %v197_v18, %v198_v48  ;;  %v135_v22 = vld [vmem:[#allocation2 + $0x170] sm:$0xf]  ;;  %v152_v27 = vsub.bf16 %v2923_v19, %v87_v57 }
  0x5a   :  { %617 = vmatprep.mubr.bf16.mxu0 %v2720_v0  ;;  %857 = vmatprep.mubr.bf16.mxu1 %v2720_v0  ;;  %v186_v60 = vsub.bf16 %v2954_v15, %v122_v6  ;;  %v147_v63 = vsub.bf16 %v2890_v34, %v82_v55  ;;  %v84_v34 = vld [vmem:[#allocation2 + $0xa8] sm:$0xf]  ;;  %v151_v6 = vsub.bf16 %v2916_v25, %v86_v12  ;;  %v138_v25 = vld [vmem:[#allocation2 + $0x17c] sm:$0xf] }
  0x5b   :  { %2385 = vmatpush3.bf16.msra.mxu1 %v2861_v39  ;;  %v2952_v39 = vcombine.low %v193_v10, %v194_v14  ;;  %v148_v10 = vsub.bf16 %v50_v21, %v83_v3  ;;  %v195_v14 = vsub.bf16 %v2841_v17, %v131_v4  ;;  %v149_v21 = vsub.bf16 %v2912_v32, %v84_v34  ;;  %v136_v32 = vld [vmem:[#allocation2 + $0x174] sm:$0xf]  ;;  %v89_v3 = vld [vmem:[#allocation2 + $0xbc] sm:$0xf]  ;;  %v137_v4 = vld [vmem:[#allocation2 + $0x178] sm:$0xf] }
  0x5c   :  { %2386 = vmatprep.subr.bf16.mxu1 %v2511_v16  ;;  %v2962_v62 = vcombine.low %v185_v58, %v186_v60  ;;  %v150_v17 = vsub.bf16 %v2914_v41, %v85_v42  ;;  %v199_v28 = vsub.bf16 %v2854_v29, %v135_v22  ;;  %v200_v41 = vsub.bf16 %v2863_v40, %v136_v32  ;;  %v88_v60 = vld [vmem:[#allocation2 + $0xb8] sm:$0xf] }
  0x5d   :  { %v2971_v31 = vcombine.low %v195_v14, %v196_v23  ;;  %v2286_v55 = vcombine.low %v151_v6, %v152_v27  ;;  %v153_v8 = vsub.bf16 %v2931_v49, %v88_v60  ;;  %v154_v29 = vsub.bf16 %v2954_v15, %v89_v3 }
  0x5e   :  { %v2989_v58 = vcombine.low %v199_v28, %v200_v41  ;;  %v201_v40 = vsub.bf16 %v2865_v43, %v137_v4  ;;  %v202_v19 = vsub.bf16 %v2867_v44, %v138_v25 }
  0x5f   :  { %2387 = vmatpush3.bf16.msra.mxu1 %v2511_v16  ;;  %v2284_v16 = vcombine.low %v147_v63, %v148_v10  ;;  %v2287_v63 = vcombine.low %v153_v8, %v154_v29 }
  0x60   :  { %2388 = vmatprep.subr.bf16.mxu1 %v2512_v47 }
  0x61   :  { %618 = vmatmul.mubr.bf16.gmra.mrb[12].mxu0 %v2944_v13  ;;  %858 = vmatmul.mubr.bf16.gmra.mrb[12].mxu1 %v2952_v39 }
  0x62   :  { %627 = vmatprep.mubr.bf16.mxu0 %v2720_v0  ;;  %867 = vmatprep.mubr.bf16.mxu1 %v2720_v0 }
  0x63   :  { %2389 = vmatpush3.bf16.msra.mxu1 %v2512_v47  ;;  %v2285_v47 = vcombine.low %v149_v21, %v150_v17 }
  0x64   :  { %2390 = vmatprep.subr.bf16.mxu1 %v2513_v9 }
  0x67   :  { %2391 = vmatpush3.bf16.msra.mxu1 %v2513_v9  ;;  %v2998_v9 = vcombine.low %v201_v40, %v202_v19 }
  0x69   :  { %628 = vmatmul.mubr.bf16.gmra.mrb[16].mxu0 %v2284_v16  ;;  %868 = vmatmul.mubr.bf16.gmra.mrb[16].mxu1 %v2971_v31 }
  0x6a   :  { %637 = vmatprep.mubr.bf16.mxu0 %v2720_v0  ;;  %877 = vmatprep.mubr.bf16.mxu1 %v2720_v0 }
  0x71   :  { %638 = vmatmul.mubr.bf16.gmra.mrb[20].mxu0 %v2285_v47  ;;  %878 = vmatmul.mubr.bf16.gmra.mrb[20].mxu1 %v2980_v56 }
  0x72   :  { %647 = vmatprep.mubr.bf16.mxu0 %v2720_v0  ;;  %887 = vmatprep.mubr.bf16.mxu1 %v2720_v0 }
  0x79   :  { %648 = vmatmul.mubr.bf16.gmra.mrb[24].mxu0 %v2286_v55  ;;  %888 = vmatmul.mubr.bf16.gmra.mrb[24].mxu1 %v2989_v58 }
  0x7a   :  { %657 = vmatprep.mubr.bf16.mxu0 %v2720_v0  ;;  %897 = vmatprep.mubr.bf16.mxu1 %v2720_v0 }
  0x81   :  { %658 = vmatmul.mubr.bf16.gmra.mrb[28].mxu0 %v2287_v63  ;;  %898 = vmatmul.mubr.bf16.gmra.mrb[28].mxu1 %v2998_v9 }
  0x82   :  { %667 = vmatprep.mubr.bf16.mxu0 %v2720_v0  ;;  %2392 = vmatprep.mubr.bf16.mxu1 %v2783_v37 }
  0x89   :  { %668 = vmatmul.mubr.bf16.gmra.mrb[32].mxu0 %v2869_v35  ;;  %2393 = vmatmul.mubr.bf16.vlgmr.msra.gmra.mrb[32].mxu1 %v2819_v1 }
  0x8a   :  { %677 = vmatprep.mubr.bf16.mxu0 %v2720_v0  ;;  %2396 = vmatprep.mubr.bf16.mxu1 %v2827_v5 }
  0x91   :  { %678 = vmatmul.mubr.bf16.gmra.mrb[36].mxu0 %v2873_v50  ;;  %2397 = vmatmul.mubr.bf16.gmra.mrb[36].mxu1 %v2944_v13 }
  0x92   :  { %687 = vmatprep.mubr.bf16.mxu0 %v2720_v0  ;;  %2400 = vmatprep.mubr.bf16.mxu1 %v2284_v16 }
  0x99   :  { %688 = vmatmul.mubr.bf16.gmra.mrb[40].mxu0 %v2875_v51  ;;  %2401 = vmatmul.mubr.bf16.gmra.mrb[40].mxu1 %v2285_v47 }
  0x9a   :  { %697 = vmatprep.mubr.bf16.mxu0 %v2720_v0  ;;  %2404 = vmatprep.mubr.bf16.mxu1 %v2286_v55 }
  0xa1   :  { %698 = vmatmul.mubr.bf16.gmra.mrb[44].mxu0 %v2880_v11  ;;  %2405 = vmatmul.mubr.bf16.gmra.mrb[44].mxu1 %v2287_v63 }
  0xa2   :  { %707 = vmatprep.mubr.bf16.mxu0 %v2720_v0  ;;  %2408 = vmatprep.mubr.bf16.mxu1 %v2869_v35 }
  0xa9   :  { %708 = vmatmul.mubr.bf16.gmra.mrb[48].mxu0 %v2885_v24  ;;  %2409 = vmatmul.mubr.bf16.gmra.mrb[48].mxu1 %v2873_v50 }
  0xaa   :  { %717 = vmatprep.mubr.bf16.mxu0 %v2720_v0  ;;  %2412 = vmatprep.mubr.bf16.mxu1 %v2875_v51 }
  0xb1   :  { %718 = vmatmul.mubr.bf16.gmra.mrb[52].mxu0 %v2892_v36  ;;  %2413 = vmatmul.mubr.bf16.gmra.mrb[52].mxu1 %v2880_v11 }
  0xb2   :  { %727 = vmatprep.mubr.bf16.mxu0 %v2720_v0  ;;  %2416 = vmatprep.mubr.bf16.mxu1 %v2885_v24 }
  0xb9   :  { %728 = vmatmul.mubr.bf16.gmra.mrb[56].mxu0 %v2898_v53  ;;  %2417 = vmatmul.mubr.bf16.gmra.mrb[56].mxu1 %v2892_v36 }
  0xba   :  { %737 = vmatprep.mubr.bf16.mxu0 %v2720_v0  ;;  %2420 = vmatprep.mubr.bf16.mxu1 %v2898_v53 }
  0xc1   :  { %738 = vmatmul.mubr.bf16.gmra.mrb[60].mxu0 %v2900_v54  ;;  %2421 = vmatmul.mubr.bf16.gmra.mrb[60].mxu1 %v2900_v54 }
  0xc2   :  { %747 = vmatprep.mubr.bf16.mxu0 %v2720_v0  ;;  %2424 = vmatprep.mubr.bf16.mxu1 %v2905_v30 }
  0xc9   :  { %748 = vmatmul.mubr.bf16.gmra.mrb[64].mxu0 %v2905_v30  ;;  %2425 = vmatmul.mubr.bf16.gmra.mrb[64].mxu1 %v2918_v26 }
  0xca   :  { %757 = vmatprep.mubr.bf16.mxu0 %v2720_v0  ;;  %2428 = vmatprep.mubr.bf16.mxu1 %v2925_v20 }
  0xd1   :  { %758 = vmatmul.mubr.bf16.gmra.mrb[68].mxu0 %v2918_v26  ;;  %2429 = vmatmul.mubr.bf16.gmra.mrb[68].mxu1 %v2927_v33 }
  0xd2   :  { %767 = vmatprep.mubr.bf16.mxu0 %v2720_v0  ;;  %2432 = vmatprep.mubr.bf16.mxu1 %v2933_v52 }
  0xd9   :  { %768 = vmatmul.mubr.bf16.gmra.mrb[72].mxu0 %v2925_v20  ;;  %2433 = vmatmul.mubr.bf16.gmra.mrb[72].mxu1 %v2956_v59 }
  0xda   :  { %777 = vmatprep.mubr.bf16.mxu0 %v2720_v0  ;;  %2436 = vmatprep.mubr.bf16.mxu1 %v2958_v61 }
  0xe1   :  { %778 = vmatmul.mubr.bf16.gmra.mrb[76].mxu0 %v2927_v33  ;;  %2437 = vmatmul.mubr.bf16.gmra.mrb[76].mxu1 %v2962_v62 }
  0xe2   :  { %787 = vmatprep.mubr.bf16.mxu0 %v2720_v0  ;;  %2440 = vmatprep.mubr.bf16.mxu1 %v2785_v38 }
  0xe9   :  { %788 = vmatmul.mubr.bf16.gmra.mrb[80].mxu0 %v2933_v52  ;;  %2441 = vmatmul.mubr.bf16.gmra.mrb[80].mxu1 %v2821_v2 }
  0xea   :  { %797 = vmatprep.mubr.bf16.mxu0 %v2720_v0  ;;  %2444 = vmatprep.mubr.bf16.mxu1 %v2831_v7 }
  0xf1   :  { %798 = vmatmul.mubr.bf16.gmra.mrb[84].mxu0 %v2956_v59  ;;  %2445 = vmatmul.mubr.bf16.gmra.mrb[84].mxu1 %v2952_v39 }
  0xf2   :  { %807 = vmatprep.mubr.bf16.mxu0 %v2720_v0  ;;  %2448 = vmatprep.mubr.bf16.mxu1 %v2971_v31 }
  0xf9   :  { %808 = vmatmul.mubr.bf16.gmra.mrb[88].mxu0 %v2958_v61  ;;  %2449 = vmatmul.mubr.bf16.gmra.mrb[88].mxu1 %v2980_v56 }
  0xfa   :  { %817 = vmatprep.mubr.bf16.mxu0 %v2720_v0  ;;  %2452 = vmatprep.mubr.bf16.mxu1 %v2989_v58 }
 0x101   :  { %818 = vmatmul.mubr.bf16.gmra.mrb[92].mxu0 %v2962_v62  ;;  %2453 = vmatmul.mubr.bf16.gmra.mrb[92].mxu1 %v2998_v9 }
 0x11c   :  { %v589_v37 = vpop.f32.mrb[0].mxu0  ;;  %v829_v38 = vpop.f32.mrb[0].mxu1 }
 0x11d   :  { %v590_v1 = vadd.f32 1e-06, %v589_v37  ;;  %v830_v2 = vadd.f32 1e-06, %v829_v38  ;;  %v591_v5 = vpop.f32.mrb[1].mxu0  ;;  %v831_v7 = vpop.f32.mrb[1].mxu1 }
 0x11e   :  { %v592_v43 = vadd.f32 1e-06, %v591_v5  ;;  %v832_v44 = vadd.f32 1e-06, %v831_v7  ;;  %v593_v35 = vpop.f32.mrb[2].mxu0  ;;  %v833_v50 = vpop.f32.mrb[2].mxu1 }
 0x11f   :  { %v1197_v51 = vmul.f32 %v590_v1, %v590_v1  ;;  %v1341_v11 = vmul.f32 %v830_v2, %v830_v2  ;;  %v594_v24 = vadd.f32 1e-06, %v593_v35  ;;  %v834_v0 = vadd.f32 1e-06, %v833_v50  ;;  %v595_v36 = vpop.f32.mrb[3].mxu0  ;;  %v835_v53 = vpop.f32.mrb[3].mxu1 }
 0x120   :  { %v1198_v54 = vmul.f32 %v592_v43, %v592_v43  ;;  %v1342_v30 = vmul.f32 %v832_v44, %v832_v44  ;;  %v596_v26 = vadd.f32 1e-06, %v595_v36  ;;  %v836_v20 = vadd.f32 1e-06, %v835_v53 }
 0x121   :  { %v1200_v33 = vmul.f32 %v594_v24, %v594_v24  ;;  %v1344_v49 = vmul.f32 %v834_v0, %v834_v0 }
 0x122   :  { %v3061_v52 = vadd.f32 %v1198_v54, %v1197_v51  ;;  %v3063_v13 = vadd.f32 %v1342_v30, %v1341_v11  ;;  %v1201_v39 = vmul.f32 %v596_v26, %v596_v26  ;;  %v1345_v15 = vmul.f32 %v836_v20, %v836_v20 }
 0x124   :  { %v3065_v59 = vadd.f32 %v1201_v39, %v1200_v33  ;;  %v3067_v61 = vadd.f32 %v1345_v15, %v1344_v49  ;;  %v599_v62 = vpop.f32.mrb[4].mxu0  ;;  %v839_v10 = vpop.f32.mrb[4].mxu1 }
 0x125   :  { %v600_v14 = vadd.f32 1e-06, %v599_v62  ;;  %v840_v23 = vadd.f32 1e-06, %v839_v10  ;;  %v601_v16 = vpop.f32.mrb[5].mxu0  ;;  %v841_v31 = vpop.f32.mrb[5].mxu1 }
 0x126   :  { %v602_v34 = vadd.f32 1e-06, %v601_v16  ;;  %v842_v42 = vadd.f32 1e-06, %v841_v31  ;;  %v603_v45 = vpop.f32.mrb[6].mxu0  ;;  %v843_v46 = vpop.f32.mrb[6].mxu1 }
 0x127   :  { %v1203_v21 = vmul.f32 %v600_v14, %v600_v14  ;;  %v1347_v17 = vmul.f32 %v840_v23, %v840_v23  ;;  %v604_v18 = vadd.f32 1e-06, %v603_v45  ;;  %v844_v48 = vadd.f32 1e-06, %v843_v46  ;;  %v605_v47 = vpop.f32.mrb[7].mxu0  ;;  %v845_v56 = vpop.f32.mrb[7].mxu1 }
 0x128   :  { %v1204_v12 = vmul.f32 %v602_v34, %v602_v34  ;;  %v1348_v57 = vmul.f32 %v842_v42, %v842_v42  ;;  %v606_v22 = vadd.f32 1e-06, %v605_v47  ;;  %v846_v32 = vadd.f32 1e-06, %v845_v56 }
 0x129   :  { %v1206_v6 = vmul.f32 %v604_v18, %v604_v18  ;;  %v1350_v27 = vmul.f32 %v844_v48, %v844_v48 }
 0x12a   :  { %v3069_v28 = vadd.f32 %v1348_v57, %v1347_v17  ;;  %v1207_v41 = vmul.f32 %v606_v22, %v606_v22  ;;  %v1351_v55 = vmul.f32 %v846_v32, %v846_v32  ;;  %v3071_v58 = vadd.f32 %v1204_v12, %v1203_v21 }
 0x12c   :  { %v3073_v60 = vadd.f32 %v1207_v41, %v1206_v6  ;;  %v3075_v3 = vadd.f32 %v1351_v55, %v1350_v27  ;;  %v609_v4 = vpop.f32.mrb[8].mxu0  ;;  %v849_v25 = vpop.f32.mrb[8].mxu1 }
 0x12d   :  { %v610_v8 = vadd.f32 1e-06, %v609_v4  ;;  %v850_v29 = vadd.f32 1e-06, %v849_v25  ;;  %v611_v40 = vpop.f32.mrb[9].mxu0  ;;  %v851_v19 = vpop.f32.mrb[9].mxu1 }
 0x12e   :  { %v612_v63 = vadd.f32 1e-06, %v611_v40  ;;  %v852_v9 = vadd.f32 1e-06, %v851_v19  ;;  %v613_v37 = vpop.f32.mrb[10].mxu0  ;;  %v853_v38 = vpop.f32.mrb[10].mxu1 }
 0x12f   :  { %v1209_v1 = vmul.f32 %v610_v8, %v610_v8  ;;  %v1353_v2 = vmul.f32 %v850_v29, %v850_v29  ;;  %v614_v5 = vadd.f32 1e-06, %v613_v37  ;;  %v854_v7 = vadd.f32 1e-06, %v853_v38  ;;  %v615_v43 = vpop.f32.mrb[11].mxu0  ;;  %v855_v44 = vpop.f32.mrb[11].mxu1 }
 0x130   :  { %v1210_v35 = vmul.f32 %v612_v63, %v612_v63  ;;  %v1354_v50 = vmul.f32 %v852_v9, %v852_v9  ;;  %v616_v51 = vadd.f32 1e-06, %v615_v43  ;;  %v856_v11 = vadd.f32 1e-06, %v855_v44 }
 0x131   :  { %v1212_v24 = vmul.f32 %v614_v5, %v614_v5  ;;  %v1356_v0 = vmul.f32 %v854_v7, %v854_v7 }
 0x132   :  { %v3077_v36 = vadd.f32 %v1210_v35, %v1209_v1  ;;  %v3079_v53 = vadd.f32 %v1354_v50, %v1353_v2  ;;  %v1213_v54 = vmul.f32 %v616_v51, %v616_v51  ;;  %v1357_v30 = vmul.f32 %v856_v11, %v856_v11 }
 0x134   :  { %v3081_v26 = vadd.f32 %v1213_v54, %v1212_v24  ;;  %v3083_v20 = vadd.f32 %v1357_v30, %v1356_v0  ;;  %v619_v33 = vpop.f32.mrb[12].mxu0  ;;  %v859_v49 = vpop.f32.mrb[12].mxu1 }
 0x135   :  { %v620_v39 = vadd.f32 1e-06, %v619_v33  ;;  %v860_v15 = vadd.f32 1e-06, %v859_v49  ;;  %v621_v62 = vpop.f32.mrb[13].mxu0  ;;  %v861_v10 = vpop.f32.mrb[13].mxu1 }
 0x136   :  { %v622_v14 = vadd.f32 1e-06, %v621_v62  ;;  %v862_v23 = vadd.f32 1e-06, %v861_v10  ;;  %v623_v16 = vpop.f32.mrb[14].mxu0  ;;  %v863_v31 = vpop.f32.mrb[14].mxu1 }
 0x137   :  { %v1215_v34 = vmul.f32 %v620_v39, %v620_v39  ;;  %v1359_v42 = vmul.f32 %v860_v15, %v860_v15  ;;  %v624_v45 = vadd.f32 1e-06, %v623_v16  ;;  %v864_v46 = vadd.f32 1e-06, %v863_v31  ;;  %v625_v21 = vpop.f32.mrb[15].mxu0  ;;  %v865_v17 = vpop.f32.mrb[15].mxu1 }
 0x138   :  { %v1216_v18 = vmul.f32 %v622_v14, %v622_v14  ;;  %v1360_v48 = vmul.f32 %v862_v23, %v862_v23  ;;  %v626_v47 = vadd.f32 1e-06, %v625_v21  ;;  %v866_v56 = vadd.f32 1e-06, %v865_v17 }
 0x139   :  { %v1218_v12 = vmul.f32 %v624_v45, %v624_v45  ;;  %v1362_v57 = vmul.f32 %v864_v46, %v864_v46 }
 0x13a   :  { %v3085_v22 = vadd.f32 %v1216_v18, %v1215_v34  ;;  %v3087_v32 = vadd.f32 %v1360_v48, %v1359_v42  ;;  %v1219_v6 = vmul.f32 %v626_v47, %v626_v47  ;;  %v1363_v27 = vmul.f32 %v866_v56, %v866_v56 }
 0x13c   :  { %v3089_v41 = vadd.f32 %v1219_v6, %v1218_v12  ;;  %v3091_v55 = vadd.f32 %v1363_v27, %v1362_v57  ;;  %v629_v4 = vpop.f32.mrb[16].mxu0  ;;  %v869_v25 = vpop.f32.mrb[16].mxu1 }
 0x13d   :  { %v630_v8 = vadd.f32 1e-06, %v629_v4  ;;  %v870_v29 = vadd.f32 1e-06, %v869_v25  ;;  %v631_v40 = vpop.f32.mrb[17].mxu0  ;;  %v871_v19 = vpop.f32.mrb[17].mxu1 }
 0x13e   :  { %v632_v63 = vadd.f32 1e-06, %v631_v40  ;;  %v872_v9 = vadd.f32 1e-06, %v871_v19  ;;  %v633_v37 = vpop.f32.mrb[18].mxu0  ;;  %v873_v38 = vpop.f32.mrb[18].mxu1 }
 0x13f   :  { %v1221_v1 = vmul.f32 %v630_v8, %v630_v8  ;;  %v1365_v2 = vmul.f32 %v870_v29, %v870_v29  ;;  %v634_v5 = vadd.f32 1e-06, %v633_v37  ;;  %v874_v7 = vadd.f32 1e-06, %v873_v38  ;;  %v635_v43 = vpop.f32.mrb[19].mxu0  ;;  %v875_v44 = vpop.f32.mrb[19].mxu1 }
 0x140   :  { %v1222_v35 = vmul.f32 %v632_v63, %v632_v63  ;;  %v1366_v50 = vmul.f32 %v872_v9, %v872_v9  ;;  %v636_v51 = vadd.f32 1e-06, %v635_v43  ;;  %v876_v11 = vadd.f32 1e-06, %v875_v44 }
 0x141   :  { %v1224_v24 = vmul.f32 %v634_v5, %v634_v5  ;;  %v1368_v0 = vmul.f32 %v874_v7, %v874_v7 }
 0x142   :  { %v3093_v54 = vadd.f32 %v1222_v35, %v1221_v1  ;;  %v3095_v30 = vadd.f32 %v1366_v50, %v1365_v2  ;;  %v1225_v33 = vmul.f32 %v636_v51, %v636_v51  ;;  %v1369_v49 = vmul.f32 %v876_v11, %v876_v11 }
 0x144   :  { %v3097_v39 = vadd.f32 %v1225_v33, %v1224_v24  ;;  %v3099_v15 = vadd.f32 %v1369_v49, %v1368_v0  ;;  %v639_v62 = vpop.f32.mrb[20].mxu0  ;;  %v879_v10 = vpop.f32.mrb[20].mxu1 }
 0x145   :  { %v640_v14 = vadd.f32 1e-06, %v639_v62  ;;  %v880_v23 = vadd.f32 1e-06, %v879_v10  ;;  %v641_v16 = vpop.f32.mrb[21].mxu0  ;;  %v881_v31 = vpop.f32.mrb[21].mxu1 }
 0x146   :  { %v642_v34 = vadd.f32 1e-06, %v641_v16  ;;  %v882_v42 = vadd.f32 1e-06, %v881_v31  ;;  %v643_v45 = vpop.f32.mrb[22].mxu0  ;;  %v883_v46 = vpop.f32.mrb[22].mxu1 }
 0x147   :  { %v1227_v21 = vmul.f32 %v640_v14, %v640_v14  ;;  %v1371_v17 = vmul.f32 %v880_v23, %v880_v23  ;;  %v644_v18 = vadd.f32 1e-06, %v643_v45  ;;  %v884_v48 = vadd.f32 1e-06, %v883_v46  ;;  %v645_v47 = vpop.f32.mrb[23].mxu0  ;;  %v885_v56 = vpop.f32.mrb[23].mxu1 }
 0x148   :  { %v1228_v12 = vmul.f32 %v642_v34, %v642_v34  ;;  %v1372_v57 = vmul.f32 %v882_v42, %v882_v42  ;;  %v646_v6 = vadd.f32 1e-06, %v645_v47  ;;  %v886_v27 = vadd.f32 1e-06, %v885_v56 }
 0x149   :  { %v1230_v4 = vmul.f32 %v644_v18, %v644_v18  ;;  %v1374_v25 = vmul.f32 %v884_v48, %v884_v48 }
 0x14a   :  { %v3101_v8 = vadd.f32 %v1228_v12, %v1227_v21  ;;  %v3103_v29 = vadd.f32 %v1372_v57, %v1371_v17  ;;  %v1231_v40 = vmul.f32 %v646_v6, %v646_v6  ;;  %v1375_v19 = vmul.f32 %v886_v27, %v886_v27 }
 0x14c   :  { %v3105_v63 = vadd.f32 %v1231_v40, %v1230_v4  ;;  %v3107_v9 = vadd.f32 %v1375_v19, %v1374_v25  ;;  %v649_v37 = vpop.f32.mrb[24].mxu0  ;;  %v889_v38 = vpop.f32.mrb[24].mxu1 }
 0x14d   :  { %v650_v1 = vadd.f32 1e-06, %v649_v37  ;;  %v890_v2 = vadd.f32 1e-06, %v889_v38  ;;  %v651_v5 = vpop.f32.mrb[25].mxu0  ;;  %v891_v7 = vpop.f32.mrb[25].mxu1 }
 0x14e   :  { %v652_v43 = vadd.f32 1e-06, %v651_v5  ;;  %v892_v44 = vadd.f32 1e-06, %v891_v7  ;;  %v653_v35 = vpop.f32.mrb[26].mxu0  ;;  %v893_v50 = vpop.f32.mrb[26].mxu1 }
 0x14f   :  { %v1233_v51 = vmul.f32 %v650_v1, %v650_v1  ;;  %v1377_v11 = vmul.f32 %v890_v2, %v890_v2  ;;  %v654_v24 = vadd.f32 1e-06, %v653_v35  ;;  %v894_v0 = vadd.f32 1e-06, %v893_v50  ;;  %v655_v33 = vpop.f32.mrb[27].mxu0  ;;  %v895_v49 = vpop.f32.mrb[27].mxu1 }
 0x150   :  { %v1234_v62 = vmul.f32 %v652_v43, %v652_v43  ;;  %v1378_v10 = vmul.f32 %v892_v44, %v892_v44  ;;  %v656_v14 = vadd.f32 1e-06, %v655_v33  ;;  %v896_v23 = vadd.f32 1e-06, %v895_v49 }
 0x151   :  { %v1236_v16 = vmul.f32 %v654_v24, %v654_v24  ;;  %v1380_v31 = vmul.f32 %v894_v0, %v894_v0 }
 0x152   :  { %v3109_v34 = vadd.f32 %v1234_v62, %v1233_v51  ;;  %v3111_v42 = vadd.f32 %v1378_v10, %v1377_v11  ;;  %v1237_v45 = vmul.f32 %v656_v14, %v656_v14  ;;  %v1381_v46 = vmul.f32 %v896_v23, %v896_v23 }
 0x154   :  { %v3113_v21 = vadd.f32 %v1237_v45, %v1236_v16  ;;  %v3115_v17 = vadd.f32 %v1381_v46, %v1380_v31  ;;  %v659_v18 = vpop.f32.mrb[28].mxu0  ;;  %v899_v48 = vpop.f32.mrb[28].mxu1 }
 0x155   :  { %v660_v47 = vadd.f32 1e-06, %v659_v18  ;;  %v900_v56 = vadd.f32 1e-06, %v899_v48  ;;  %v661_v12 = vpop.f32.mrb[29].mxu0  ;;  %v901_v57 = vpop.f32.mrb[29].mxu1 }
 0x156   :  { %v662_v6 = vadd.f32 1e-06, %v661_v12  ;;  %v902_v27 = vadd.f32 1e-06, %v901_v57  ;;  %v663_v4 = vpop.f32.mrb[30].mxu0  ;;  %v903_v25 = vpop.f32.mrb[30].mxu1 }
 0x157   :  { %v1239_v40 = vmul.f32 %v660_v47, %v660_v47  ;;  %v1383_v19 = vmul.f32 %v900_v56, %v900_v56  ;;  %v664_v37 = vadd.f32 1e-06, %v663_v4  ;;  %v904_v38 = vadd.f32 1e-06, %v903_v25  ;;  %v665_v1 = vpop.f32.mrb[31].mxu0  ;;  %v905_v2 = vpop.f32.mrb[31].mxu1 }
 0x158   :  { %v1240_v5 = vmul.f32 %v662_v6, %v662_v6  ;;  %v1384_v7 = vmul.f32 %v902_v27, %v902_v27  ;;  %v666_v43 = vadd.f32 1e-06, %v665_v1  ;;  %v906_v44 = vadd.f32 1e-06, %v905_v2 }
 0x159   :  { %v1242_v35 = vmul.f32 %v664_v37, %v664_v37  ;;  %v1386_v50 = vmul.f32 %v904_v38, %v904_v38 }
 0x15a   :  { %v3117_v51 = vadd.f32 %v1240_v5, %v1239_v40  ;;  %v3119_v11 = vadd.f32 %v1384_v7, %v1383_v19  ;;  %v1243_v24 = vmul.f32 %v666_v43, %v666_v43  ;;  %v1387_v0 = vmul.f32 %v906_v44, %v906_v44 }
 0x15c   :  { %v3121_v33 = vadd.f32 %v1243_v24, %v1242_v35  ;;  %v3123_v49 = vadd.f32 %v1387_v0, %v1386_v50  ;;  %v669_v62 = vpop.f32.mrb[32].mxu0  ;;  %v2394_v10 = vpop.f32.mrb[32].mxu1 }
 0x15d   :  { %v670_v14 = vadd.f32 1e-06, %v669_v62  ;;  %v951_v23 = vadd.f32 1e-06, %v2394_v10  ;;  %v671_v16 = vpop.f32.mrb[33].mxu0  ;;  %v942_v31 = vpop.f32.mrb[33].mxu1 }
 0x15e   :  { %v672_v45 = vadd.f32 1e-06, %v671_v16  ;;  %v943_v46 = vadd.f32 1e-06, %v942_v31  ;;  %v673_v18 = vpop.f32.mrb[34].mxu0  ;;  %v2395_v48 = vpop.f32.mrb[34].mxu1 }
 0x15f   :  { %v1245_v47 = vmul.f32 %v670_v14, %v670_v14  ;;  %v1205_v56 = vmul.f32 %v951_v23, %v951_v23  ;;  %v674_v12 = vadd.f32 1e-06, %v673_v18  ;;  %v954_v57 = vadd.f32 1e-06, %v2395_v48  ;;  %v675_v6 = vpop.f32.mrb[35].mxu0  ;;  %v945_v27 = vpop.f32.mrb[35].mxu1 }
 0x160   :  { %v1246_v4 = vmul.f32 %v672_v45, %v672_v45  ;;  %v1199_v25 = vmul.f32 %v943_v46, %v943_v46  ;;  %v676_v40 = vadd.f32 1e-06, %v675_v6  ;;  %v946_v19 = vadd.f32 1e-06, %v945_v27 }
 0x161   :  { %v1248_v37 = vmul.f32 %v674_v12, %v674_v12  ;;  %v1208_v38 = vmul.f32 %v954_v57, %v954_v57  ;;  %v1398_v1 = vadd.f32 %v3071_v58, %v1205_v56 }
 0x162   :  { %v3126_v2 = vadd.f32 %v1246_v4, %v1245_v47  ;;  %v1249_v5 = vmul.f32 %v676_v40, %v676_v40  ;;  %v1202_v7 = vmul.f32 %v946_v19, %v946_v19  ;;  %v1390_v43 = vadd.f32 %v3061_v52, %v1199_v25 }
 0x163   :  { %1399 = vadd.xlane.f32.xlu0 %v1398_v1  ;;  %v1402_v44 = vadd.f32 %v3073_v60, %v1208_v38 }
 0x164   :  { %v3130_v35 = vadd.f32 %v1249_v5, %v1248_v37  ;;  %v679_v50 = vpop.f32.mrb[36].mxu0  ;;  %v2398_v24 = vpop.f32.mrb[36].mxu1  ;;  %v1394_v0 = vadd.f32 %v3065_v59, %v1202_v7 }
 0x165   :  { %v680_v62 = vadd.f32 1e-06, %v679_v50  ;;  %v967_v10 = vadd.f32 1e-06, %v2398_v24  ;;  %v681_v14 = vpop.f32.mrb[37].mxu0  ;;  %v958_v23 = vpop.f32.mrb[37].mxu1 }
 0x166   :  { %v682_v58 = vadd.f32 1e-06, %v681_v14  ;;  %v959_v16 = vadd.f32 1e-06, %v958_v23  ;;  %v683_v31 = vpop.f32.mrb[38].mxu0  ;;  %v2399_v45 = vpop.f32.mrb[38].mxu1 }
 0x167   :  { %v1251_v46 = vmul.f32 %v680_v62, %v680_v62  ;;  %v1217_v18 = vmul.f32 %v967_v10, %v967_v10  ;;  %v684_v52 = vadd.f32 1e-06, %v683_v31  ;;  %v970_v48 = vadd.f32 1e-06, %v2399_v45  ;;  %v685_v47 = vpop.f32.mrb[39].mxu0  ;;  %v961_v60 = vpop.f32.mrb[39].mxu1  ;;  %1391 = vadd.xlane.f32.xlu0 %v1390_v43 }
 0x168   :  { %v1252_v56 = vmul.f32 %v682_v58, %v682_v58  ;;  %v1211_v12 = vmul.f32 %v959_v16, %v959_v16  ;;  %v686_v57 = vadd.f32 1e-06, %v685_v47  ;;  %v962_v6 = vadd.f32 1e-06, %v961_v60 }
 0x169   :  { %v1254_v59 = vmul.f32 %v684_v52, %v684_v52  ;;  %v1220_v27 = vmul.f32 %v970_v48, %v970_v48  ;;  %v1414_v4 = vadd.f32 %v3085_v22, %v1217_v18 }
 0x16a   :  { %v3134_v25 = vadd.f32 %v1252_v56, %v1251_v46  ;;  %v1255_v40 = vmul.f32 %v686_v57, %v686_v57  ;;  %v1214_v19 = vmul.f32 %v962_v6, %v962_v6  ;;  %v1406_v37 = vadd.f32 %v3077_v36, %v1211_v12 }
 0x16b   :  { %1403 = vadd.xlane.f32.xlu0 %v1402_v44  ;;  %v3138_v38 = vadd.f32 %v3089_v41, %v1220_v27 }
 0x16c   :  { %v3140_v1 = vadd.f32 %v1255_v40, %v1254_v59  ;;  %v689_v5 = vpop.f32.mrb[40].mxu0  ;;  %v2402_v7 = vpop.f32.mrb[40].mxu1  ;;  %v3143_v43 = vadd.f32 %v3081_v26, %v1214_v19 }
 0x16d   :  { %v690_v50 = vadd.f32 1e-06, %v689_v5  ;;  %v983_v24 = vadd.f32 1e-06, %v2402_v7  ;;  %v691_v22 = vpop.f32.mrb[41].mxu0  ;;  %v974_v62 = vpop.f32.mrb[41].mxu1 }
 0x16e   :  { %v692_v10 = vadd.f32 1e-06, %v691_v22  ;;  %v975_v14 = vadd.f32 1e-06, %v974_v62  ;;  %v693_v23 = vpop.f32.mrb[42].mxu0  ;;  %v2403_v58 = vpop.f32.mrb[42].mxu1 }
 0x16f   :  { %v1257_v36 = vmul.f32 %v690_v50, %v690_v50  ;;  %v1229_v44 = vmul.f32 %v983_v24, %v983_v24  ;;  %v694_v16 = vadd.f32 1e-06, %v693_v23  ;;  %v986_v41 = vadd.f32 1e-06, %v2403_v58  ;;  %v695_v31 = vpop.f32.mrb[43].mxu0  ;;  %v977_v45 = vpop.f32.mrb[43].mxu1  ;;  %1395 = vadd.xlane.f32.xlu0 %v1394_v0 }
 0x170   :  { %v1258_v46 = vmul.f32 %v692_v10, %v692_v10  ;;  %v1223_v18 = vmul.f32 %v975_v14, %v975_v14  ;;  %v696_v52 = vadd.f32 1e-06, %v695_v31  ;;  %v978_v26 = vadd.f32 1e-06, %v977_v45 }
 0x171   :  { %v1260_v48 = vmul.f32 %v694_v16, %v694_v16  ;;  %v1232_v47 = vmul.f32 %v986_v41, %v986_v41  ;;  %v3146_v60 = vadd.f32 %v3101_v8, %v1229_v44 }
 0x172   :  { %v3148_v56 = vadd.f32 %v1258_v46, %v1257_v36  ;;  %v1261_v12 = vmul.f32 %v696_v52, %v696_v52  ;;  %v1226_v57 = vmul.f32 %v978_v26, %v978_v26  ;;  %v3151_v6 = vadd.f32 %v3093_v54, %v1223_v18 }
 0x173   :  { %1415 = vadd.xlane.f32.xlu0 %v1414_v4  ;;  %v3154_v59 = vadd.f32 %v3105_v63, %v1232_v47 }
 0x174   :  { %v3156_v0 = vadd.f32 %v1261_v12, %v1260_v48  ;;  %v699_v27 = vpop.f32.mrb[44].mxu0  ;;  %v2406_v40 = vpop.f32.mrb[44].mxu1  ;;  %v3159_v19 = vadd.f32 %v3097_v39, %v1226_v57 }
 0x175   :  { %v700_v8 = vadd.f32 1e-06, %v699_v27  ;;  %v999_v5 = vadd.f32 1e-06, %v2406_v40  ;;  %v701_v7 = vpop.f32.mrb[45].mxu0  ;;  %v990_v50 = vpop.f32.mrb[45].mxu1 }
 0x176   :  { %v702_v24 = vadd.f32 1e-06, %v701_v7  ;;  %v991_v22 = vadd.f32 1e-06, %v990_v50  ;;  %v703_v62 = vpop.f32.mrb[46].mxu0  ;;  %v2407_v54 = vpop.f32.mrb[46].mxu1 }
 0x177   :  { %v1263_v10 = vmul.f32 %v700_v8, %v700_v8  ;;  %v1241_v4 = vmul.f32 %v999_v5, %v999_v5  ;;  %v704_v14 = vadd.f32 1e-06, %v703_v62  ;;  %v1002_v63 = vadd.f32 1e-06, %v2407_v54  ;;  %v705_v23 = vpop.f32.mrb[47].mxu0  ;;  %v993_v58 = vpop.f32.mrb[47].mxu1  ;;  %1407 = vadd.xlane.f32.xlu0 %v1406_v37 }
 0x178   :  { %v1264_v36 = vmul.f32 %v702_v24, %v702_v24  ;;  %v1235_v44 = vmul.f32 %v991_v22, %v991_v22  ;;  %v706_v16 = vadd.f32 1e-06, %v705_v23  ;;  %v994_v39 = vadd.f32 1e-06, %v993_v58 }
 0x179   :  { %v1266_v41 = vmul.f32 %v704_v14, %v704_v14  ;;  %v1244_v31 = vmul.f32 %v1002_v63, %v1002_v63  ;;  %v3162_v45 = vadd.f32 %v3117_v51, %v1241_v4 }
 0x17a   :  { %v3164_v46 = vadd.f32 %v1264_v36, %v1263_v10  ;;  %v1267_v18 = vmul.f32 %v706_v16, %v706_v16  ;;  %v1238_v52 = vmul.f32 %v994_v39, %v994_v39  ;;  %v3167_v26 = vadd.f32 %v3109_v34, %v1235_v44 }
 0x17b   :  { %1419 = vadd.xlane.f32.xlu0 %v3138_v38  ;;  %v3171_v37 = vadd.f32 %v3121_v33, %v1244_v31 }
 0x17c   :  { %v3173_v48 = vadd.f32 %v1267_v18, %v1266_v41  ;;  %v709_v47 = vpop.f32.mrb[48].mxu0  ;;  %v2410_v12 = vpop.f32.mrb[48].mxu1  ;;  %v3176_v57 = vadd.f32 %v3113_v21, %v1238_v52 }
 0x17d   :  { %v710_v51 = vadd.f32 1e-06, %v709_v47  ;;  %v1015_v27 = vadd.f32 1e-06, %v2410_v12  ;;  %v711_v40 = vpop.f32.mrb[49].mxu0  ;;  %v1006_v8 = vpop.f32.mrb[49].mxu1 }
 0x17e   :  { %v712_v5 = vadd.f32 1e-06, %v711_v40  ;;  %v1007_v7 = vadd.f32 1e-06, %v1006_v8  ;;  %v713_v34 = vpop.f32.mrb[50].mxu0  ;;  %v2411_v50 = vpop.f32.mrb[50].mxu1 }
 0x17f   :  { %v1269_v24 = vmul.f32 %v710_v51, %v710_v51  ;;  %v1253_v38 = vmul.f32 %v1015_v27, %v1015_v27  ;;  %v714_v22 = vadd.f32 1e-06, %v713_v34  ;;  %v1018_v33 = vadd.f32 1e-06, %v2411_v50  ;;  %v715_v62 = vpop.f32.mrb[51].mxu0  ;;  %v1009_v54 = vpop.f32.mrb[51].mxu1  ;;  %1411 = vadd.xlane.f32.xlu0 %v3143_v43 }
 0x180   :  { %v1270_v10 = vmul.f32 %v712_v5, %v712_v5  ;;  %v1247_v4 = vmul.f32 %v1007_v7, %v1007_v7  ;;  %v716_v21 = vadd.f32 1e-06, %v715_v62  ;;  %v1010_v14 = vadd.f32 1e-06, %v1009_v54 }
 0x181   :  { %v1272_v63 = vmul.f32 %v714_v22, %v714_v22  ;;  %v1256_v23 = vmul.f32 %v1018_v33, %v1018_v33  ;;  %v3180_v58 = vadd.f32 %v3134_v25, %v1253_v38 }
 0x182   :  { %v3182_v36 = vadd.f32 %v1270_v10, %v1269_v24  ;;  %v1273_v44 = vmul.f32 %v716_v21, %v716_v21  ;;  %v1250_v16 = vmul.f32 %v1010_v14, %v1010_v14  ;;  %v3185_v39 = vadd.f32 %v3126_v2, %v1247_v4 }
 0x183   :  { %1431 = vadd.xlane.f32.xlu0 %v3146_v60  ;;  %v3189_v43 = vadd.f32 %v3140_v1, %v1256_v23 }
 0x184   :  { %v3191_v41 = vadd.f32 %v1273_v44, %v1272_v63  ;;  %v719_v31 = vpop.f32.mrb[52].mxu0  ;;  %v2414_v18 = vpop.f32.mrb[52].mxu1  ;;  %v3194_v52 = vadd.f32 %v3130_v35, %v1250_v16 }
 0x185   :  { %v720_v25 = vadd.f32 1e-06, %v719_v31  ;;  %v1031_v47 = vadd.f32 1e-06, %v2414_v18  ;;  %v721_v12 = vpop.f32.mrb[53].mxu0  ;;  %v1022_v51 = vpop.f32.mrb[53].mxu1 }
 0x186   :  { %v722_v27 = vadd.f32 1e-06, %v721_v12  ;;  %v1023_v40 = vadd.f32 1e-06, %v1022_v51  ;;  %v723_v2 = vpop.f32.mrb[54].mxu0  ;;  %v2415_v8 = vpop.f32.mrb[54].mxu1 }
 0x187   :  { %v1275_v5 = vmul.f32 %v720_v25, %v720_v25  ;;  %v1265_v60 = vmul.f32 %v1031_v47, %v1031_v47  ;;  %v724_v7 = vadd.f32 1e-06, %v723_v2  ;;  %v1034_v1 = vadd.f32 1e-06, %v2415_v8  ;;  %v725_v34 = vpop.f32.mrb[55].mxu0  ;;  %v1025_v50 = vpop.f32.mrb[55].mxu1  ;;  %1423 = vadd.xlane.f32.xlu0 %v3151_v6 }
 0x188   :  { %v1276_v24 = vmul.f32 %v722_v27, %v722_v27  ;;  %v1259_v38 = vmul.f32 %v1023_v40, %v1023_v40  ;;  %v726_v35 = vadd.f32 1e-06, %v725_v34  ;;  %v1026_v22 = vadd.f32 1e-06, %v1025_v50 }
 0x189   :  { %v1278_v33 = vmul.f32 %v724_v7, %v724_v7  ;;  %v1268_v62 = vmul.f32 %v1034_v1, %v1034_v1  ;;  %v3198_v54 = vadd.f32 %v3164_v46, %v1265_v60 }
 0x18a   :  { %v1493_v10 = vadd.f32 %v1276_v24, %v1275_v5  ;;  %v1279_v4 = vmul.f32 %v726_v35, %v726_v35  ;;  %v1262_v21 = vmul.f32 %v1026_v22, %v1026_v22  ;;  %v3201_v14 = vadd.f32 %v3148_v56, %v1259_v38 }
 0x18b   :  { %1435 = vadd.xlane.f32.xlu0 %v3154_v59  ;;  %v3205_v63 = vadd.f32 %v3173_v48, %v1268_v62 }
 0x18c   :  { %v1497_v6 = vadd.f32 %v1279_v4, %v1278_v33  ;;  %v729_v23 = vpop.f32.mrb[56].mxu0  ;;  %v2418_v44 = vpop.f32.mrb[56].mxu1  ;;  %v3208_v16 = vadd.f32 %v3156_v0, %v1262_v21 }
 0x18d   :  { %v730_v31 = vadd.f32 1e-06, %v729_v23  ;;  %v1047_v46 = vadd.f32 1e-06, %v2418_v44  ;;  %v731_v18 = vpop.f32.mrb[57].mxu0  ;;  %v1038_v25 = vpop.f32.mrb[57].mxu1 }
 0x18e   :  { %v732_v47 = vadd.f32 1e-06, %v731_v18  ;;  %v1039_v12 = vadd.f32 1e-06, %v1038_v25  ;;  %v733_v51 = vpop.f32.mrb[58].mxu0  ;;  %v2419_v56 = vpop.f32.mrb[58].mxu1 }
 0x18f   :  { %v1281_v27 = vmul.f32 %v730_v31, %v730_v31  ;;  %v1277_v40 = vmul.f32 %v1047_v46, %v1047_v46  ;;  %v734_v59 = vadd.f32 1e-06, %v733_v51  ;;  %v1050_v2 = vadd.f32 1e-06, %v2419_v56  ;;  %v735_v48 = vpop.f32.mrb[59].mxu0  ;;  %v1041_v8 = vpop.f32.mrb[59].mxu1  ;;  %1427 = vadd.xlane.f32.xlu0 %v3159_v19 }
 0x190   :  { %v1282_v5 = vmul.f32 %v732_v47, %v732_v47  ;;  %v1271_v60 = vmul.f32 %v1039_v12, %v1039_v12  ;;  %v736_v0 = vadd.f32 1e-06, %v735_v48  ;;  %v1042_v7 = vadd.f32 1e-06, %v1041_v8 }
 0x191   :  { %v1284_v1 = vmul.f32 %v734_v59, %v734_v59  ;;  %v1280_v34 = vmul.f32 %v1050_v2, %v1050_v2  ;;  %v3211_v50 = vadd.f32 %v1493_v10, %v1277_v40 }
 0x192   :  { %v1501_v24 = vadd.f32 %v1282_v5, %v1281_v27  ;;  %v1285_v38 = vmul.f32 %v736_v0, %v736_v0  ;;  %v1274_v35 = vmul.f32 %v1042_v7, %v1042_v7  ;;  %v3214_v22 = vadd.f32 %v3182_v36, %v1271_v60 }
 0x193   :  { %1447 = vadd.xlane.f32.xlu0 %v3162_v45  ;;  %v3217_v33 = vadd.f32 %v1497_v6, %v1280_v34 }
 0x194   :  { %v1505_v62 = vadd.f32 %v1285_v38, %v1284_v1  ;;  %v739_v19 = vpop.f32.mrb[60].mxu0  ;;  %v2422_v4 = vpop.f32.mrb[60].mxu1  ;;  %v3220_v21 = vadd.f32 %v3191_v41, %v1274_v35 }
 0x195   :  { %v740_v23 = vadd.f32 1e-06, %v739_v19  ;;  %v1063_v44 = vadd.f32 1e-06, %v2422_v4  ;;  %v741_v10 = vpop.f32.mrb[61].mxu0  ;;  %v1054_v31 = vpop.f32.mrb[61].mxu1 }
 0x196   :  { %v742_v46 = vadd.f32 1e-06, %v741_v10  ;;  %v1055_v18 = vadd.f32 1e-06, %v1054_v31  ;;  %v743_v25 = vpop.f32.mrb[62].mxu0  ;;  %v2423_v47 = vpop.f32.mrb[62].mxu1 }
 0x197   :  { %v1287_v36 = vmul.f32 %v740_v23, %v740_v23  ;;  %v1289_v12 = vmul.f32 %v1063_v44, %v1063_v44  ;;  %v744_v51 = vadd.f32 1e-06, %v743_v25  ;;  %v1066_v45 = vadd.f32 1e-06, %v2423_v47  ;;  %v745_v6 = vpop.f32.mrb[63].mxu0  ;;  %v1057_v56 = vpop.f32.mrb[63].mxu1  ;;  %1439 = vadd.xlane.f32.xlu0 %v3167_v26 }
 0x198   :  { %v1288_v27 = vmul.f32 %v742_v46, %v742_v46  ;;  %v1283_v40 = vmul.f32 %v1055_v18, %v1055_v18  ;;  %v746_v41 = vadd.f32 1e-06, %v745_v6  ;;  %v1058_v59 = vadd.f32 1e-06, %v1057_v56 }
 0x199   :  { %v1290_v2 = vmul.f32 %v744_v51, %v744_v51  ;;  %v1292_v0 = vmul.f32 %v1066_v45, %v1066_v45 }
 0x19a   :  { %v1509_v48 = vadd.f32 %v1288_v27, %v1287_v36  ;;  %v1291_v8 = vmul.f32 %v746_v41, %v746_v41  ;;  %v1286_v5 = vmul.f32 %v1058_v59, %v1058_v59  ;;  %v3223_v60 = vadd.f32 %v1501_v24, %v1283_v40 }
 0x19b   :  { %1451 = vadd.xlane.f32.xlu0 %v3171_v37 }
 0x19c   :  { %v1513_v7 = vadd.f32 %v1291_v8, %v1290_v2  ;;  %v749_v1 = vpop.f32.mrb[64].mxu0  ;;  %v2426_v34 = vpop.f32.mrb[64].mxu1  ;;  %v3226_v38 = vadd.f32 %v1505_v62, %v1286_v5  ;;  %v3228_v35 = vadd.f32 %v1509_v48, %v1289_v12 }
 0x19d   :  { %v750_v26 = vadd.f32 1e-06, %v749_v1  ;;  %v751_v19 = vpop.f32.mrb[65].mxu0  ;;  %v1070_v4 = vpop.f32.mrb[65].mxu1  ;;  %v1079_v5 = vadd.f32 1e-06, %v2426_v34 }
 0x19e   :  { %v752_v23 = vadd.f32 1e-06, %v751_v19  ;;  %v1071_v44 = vadd.f32 1e-06, %v1070_v4  ;;  %v753_v10 = vpop.f32.mrb[66].mxu0  ;;  %v2427_v31 = vpop.f32.mrb[66].mxu1  ;;  %v3230_v46 = vadd.f32 %v1513_v7, %v1292_v0 }
 0x19f   :  { %v1293_v24 = vmul.f32 %v750_v26, %v750_v26  ;;  %v754_v18 = vadd.f32 1e-06, %v753_v10  ;;  %v755_v37 = vpop.f32.mrb[67].mxu0  ;;  %v1073_v25 = vpop.f32.mrb[67].mxu1  ;;  %1443 = vadd.xlane.f32.xlu0 %v3176_v57 }
 0x1a0   :  { %v1294_v47 = vmul.f32 %v752_v23, %v752_v23  ;;  %v1295_v62 = vmul.f32 %v1071_v44, %v1071_v44  ;;  %v756_v36 = vadd.f32 1e-06, %v755_v37  ;;  %v1074_v12 = vadd.f32 1e-06, %v1073_v25 }
 0x1a1   :  { %v1296_v51 = vmul.f32 %v754_v18, %v754_v18  ;;  %v1301_v18 = vmul.f32 %v1079_v5, %v1079_v5 }
 0x1a2   :  { %v1297_v45 = vmul.f32 %v756_v36, %v756_v36  ;;  %v1517_v6 = vadd.f32 %v1294_v47, %v1293_v24  ;;  %v1298_v27 = vmul.f32 %v1074_v12, %v1074_v12 }
 0x1a3   :  { %1463 = vadd.xlane.f32.xlu0 %v3180_v58  ;;  %v1082_v58 = vadd.f32 1e-06, %v2427_v31 }
 0x1a4   :  { %v1521_v56 = vadd.f32 %v1297_v45, %v1296_v51  ;;  %v759_v40 = vpop.f32.mrb[68].mxu0  ;;  %v2430_v41 = vpop.f32.mrb[68].mxu1  ;;  %v1518_v59 = vadd.f32 %v1517_v6, %v1295_v62 }
 0x1a5   :  { %v760_v2 = vadd.f32 1e-06, %v759_v40  ;;  %v761_v48 = vpop.f32.mrb[69].mxu0  ;;  %v1086_v8 = vpop.f32.mrb[69].mxu1  ;;  %v1304_v34 = vmul.f32 %v1082_v58, %v1082_v58 }
 0x1a6   :  { %v762_v0 = vadd.f32 1e-06, %v761_v48  ;;  %v763_v57 = vpop.f32.mrb[70].mxu0  ;;  %v2431_v7 = vpop.f32.mrb[70].mxu1  ;;  %1519 = vadd.xlane.f32.xlu1 %v1518_v59  ;;  %v1522_v1 = vadd.f32 %v1521_v56, %v1298_v27 }
 0x1a7   :  { %v1299_v26 = vmul.f32 %v760_v2, %v760_v2  ;;  %v764_v19 = vadd.f32 1e-06, %v763_v57  ;;  %v765_v4 = vpop.f32.mrb[71].mxu0  ;;  %v1089_v23 = vpop.f32.mrb[71].mxu1  ;;  %1455 = vadd.xlane.f32.xlu0 %v3185_v39  ;;  %v1087_v39 = vadd.f32 1e-06, %v1086_v8 }
 0x1a8   :  { %v1300_v44 = vmul.f32 %v762_v0, %v762_v0  ;;  %v766_v10 = vadd.f32 1e-06, %v765_v4  ;;  %v1090_v5 = vadd.f32 1e-06, %v1089_v23 }
 0x1a9   :  { %v1302_v24 = vmul.f32 %v764_v19, %v764_v19 }
 0x1aa   :  { %v1525_v37 = vadd.f32 %v1300_v44, %v1299_v26  ;;  %v1303_v25 = vmul.f32 %v766_v10, %v766_v10  ;;  %1523 = vadd.xlane.f32.xlu1 %v1522_v1  ;;  %v1307_v26 = vmul.f32 %v1087_v39, %v1087_v39  ;;  %v1310_v8 = vmul.f32 %v1090_v5, %v1090_v5 }
 0x1ab   :  { %1467 = vadd.xlane.f32.xlu0 %v3189_v43 }
 0x1ac   :  { %v1529_v47 = vadd.f32 %v1303_v25, %v1302_v24  ;;  %v769_v62 = vpop.f32.mrb[72].mxu0  ;;  %v3236_v36 = vpop.f32.mrb[72].mxu1  ;;  %v1526_v12 = vadd.f32 %v1525_v37, %v1301_v18 }
 0x1ad   :  { %v770_v51 = vadd.f32 1e-06, %v769_v62  ;;  %v771_v45 = vpop.f32.mrb[73].mxu0  ;;  %v1102_v6 = vpop.f32.mrb[73].mxu1 }
 0x1ae   :  { %v772_v31 = vadd.f32 1e-06, %v771_v45  ;;  %v773_v56 = vpop.f32.mrb[74].mxu0  ;;  %v3238_v27 = vpop.f32.mrb[74].mxu1  ;;  %1527 = vadd.xlane.f32.xlu1 %v1526_v12  ;;  %v1530_v40 = vadd.f32 %v1529_v47, %v1304_v34  ;;  %v1098_v12 = vadd.f32 1e-06, %v2431_v7 }
 0x1af   :  { %v1305_v59 = vmul.f32 %v770_v51, %v770_v51  ;;  %v774_v2 = vadd.f32 1e-06, %v773_v56  ;;  %v775_v48 = vpop.f32.mrb[75].mxu0  ;;  %v1105_v43 = vpop.f32.mrb[75].mxu1  ;;  %1459 = vadd.xlane.f32.xlu0 %v3194_v52  ;;  %v1095_v52 = vadd.f32 1e-06, %v2430_v41 }
 0x1b0   :  { %v1306_v0 = vmul.f32 %v772_v31, %v772_v31  ;;  %v776_v57 = vadd.f32 1e-06, %v775_v48  ;;  %v1316_v48 = vmul.f32 %v1098_v12, %v1098_v12  ;;  %v1103_v5 = vadd.f32 1e-06, %v1102_v6 }
 0x1b1   :  { %v1308_v1 = vmul.f32 %v774_v2, %v774_v2 }
 0x1b2   :  { %v1533_v19 = vadd.f32 %v1306_v0, %v1305_v59  ;;  %v1309_v4 = vmul.f32 %v776_v57, %v776_v57  ;;  %1531 = vadd.xlane.f32.xlu1 %v1530_v40  ;;  %v1313_v59 = vmul.f32 %v1095_v52, %v1095_v52  ;;  %v1106_v0 = vadd.f32 1e-06, %v1105_v43 }
 0x1b3   :  { %1479 = vadd.xlane.f32.xlu0 %v3198_v54 }
 0x1b4   :  { %v1537_v58 = vadd.f32 %v1309_v4, %v1308_v1  ;;  %v779_v44 = vpop.f32.mrb[76].mxu0  ;;  %v3242_v10 = vpop.f32.mrb[76].mxu1  ;;  %v1534_v24 = vadd.f32 %v1533_v19, %v1307_v26 }
 0x1b5   :  { %v780_v18 = vadd.f32 1e-06, %v779_v44  ;;  %v781_v37 = vpop.f32.mrb[77].mxu0  ;;  %v3244_v25 = vpop.f32.mrb[77].mxu1 }
 0x1b6   :  { %v782_v23 = vadd.f32 1e-06, %v781_v37  ;;  %v783_v34 = vpop.f32.mrb[78].mxu0  ;;  %v3246_v47 = vpop.f32.mrb[78].mxu1  ;;  %1535 = vadd.xlane.f32.xlu1 %v1534_v24  ;;  %v1538_v62 = vadd.f32 %v1537_v58, %v1310_v8 }
 0x1b7   :  { %v1311_v51 = vmul.f32 %v780_v18, %v780_v18  ;;  %v784_v54 = vadd.f32 1e-06, %v783_v34  ;;  %v785_v45 = vpop.f32.mrb[79].mxu0  ;;  %v3248_v39 = vpop.f32.mrb[79].mxu1  ;;  %1471 = vadd.xlane.f32.xlu0 %v3201_v14 }
 0x1b8   :  { %v1312_v31 = vmul.f32 %v782_v23, %v782_v23  ;;  %v786_v56 = vadd.f32 1e-06, %v785_v45  ;;  %v1319_v45 = vmul.f32 %v1103_v5, %v1103_v5 }
 0x1b9   :  { %v1314_v40 = vmul.f32 %v784_v54, %v784_v54 }
 0x1ba   :  { %v1541_v2 = vadd.f32 %v1312_v31, %v1311_v51  ;;  %v1315_v41 = vmul.f32 %v786_v56, %v786_v56  ;;  %1539 = vadd.xlane.f32.xlu1 %v1538_v62 }
 0x1bb   :  { %1483 = vadd.xlane.f32.xlu0 %v3205_v63 }
 0x1bc   :  { %v1545_v7 = vadd.f32 %v1315_v41, %v1314_v40  ;;  %v789_v57 = vpop.f32.mrb[80].mxu0  ;;  %v2442_v1 = vpop.f32.mrb[80].mxu1  ;;  %v1542_v26 = vadd.f32 %v1541_v2, %v1313_v59 }
 0x1bd   :  { %v790_v19 = vadd.f32 1e-06, %v789_v57  ;;  %v1143_v4 = vadd.f32 1e-06, %v2442_v1  ;;  %v791_v8 = vpop.f32.mrb[81].mxu0  ;;  %v1134_v14 = vpop.f32.mrb[81].mxu1  ;;  %v1322_v1 = vmul.f32 %v1106_v0, %v1106_v0 }
 0x1be   :  { %v792_v58 = vadd.f32 1e-06, %v791_v8  ;;  %v1135_v44 = vadd.f32 1e-06, %v1134_v14  ;;  %v793_v24 = vpop.f32.mrb[82].mxu0  ;;  %v2443_v18 = vpop.f32.mrb[82].mxu1  ;;  %1543 = vadd.xlane.f32.xlu1 %v1542_v26  ;;  %v1546_v37 = vadd.f32 %v1545_v7, %v1316_v48 }
 0x1bf   :  { %v1317_v52 = vmul.f32 %v790_v19, %v790_v19  ;;  %v1349_v23 = vmul.f32 %v1143_v4, %v1143_v4  ;;  %v794_v34 = vadd.f32 1e-06, %v793_v24  ;;  %v1146_v63 = vadd.f32 1e-06, %v2443_v18  ;;  %v795_v6 = vpop.f32.mrb[83].mxu0  ;;  %v1137_v43 = vpop.f32.mrb[83].mxu1  ;;  %1475 = vadd.xlane.f32.xlu0 %v3208_v16 }
 0x1c0   :  { %v1318_v62 = vmul.f32 %v792_v58, %v792_v58  ;;  %v1343_v12 = vmul.f32 %v1135_v44, %v1135_v44  ;;  %v796_v51 = vadd.f32 1e-06, %v795_v6  ;;  %v1138_v54 = vadd.f32 1e-06, %v1137_v43 }
 0x1c1   :  { %v1320_v31 = vmul.f32 %v794_v34, %v794_v34  ;;  %v1352_v56 = vmul.f32 %v1146_v63, %v1146_v63  ;;  %v1590_v40 = vadd.f32 %v3069_v28, %v1349_v23  ;;  %v1111_v7 = vadd.f32 1e-06, %v3236_v36 }
 0x1c2   :  { %v1549_v59 = vadd.f32 %v1318_v62, %v1317_v52  ;;  %v1321_v2 = vmul.f32 %v796_v51, %v796_v51  ;;  %v1346_v41 = vmul.f32 %v1138_v54, %v1138_v54  ;;  %1547 = vadd.xlane.f32.xlu1 %v1546_v37  ;;  %v1582_v48 = vadd.f32 %v3063_v13, %v1343_v12 }
 0x1c3   :  { %v1114_v57 = vadd.f32 1e-06, %v3238_v27  ;;  %1487 = vadd.xlane.f32.xlu0 %v3214_v22  ;;  %v1594_v16 = vadd.f32 %v3075_v3, %v1352_v56  ;;  %v1325_v43 = vmul.f32 %v1111_v7, %v1111_v7 }
 0x1c4   :  { %v1553_v5 = vadd.f32 %v1321_v2, %v1320_v31  ;;  %v799_v26 = vpop.f32.mrb[84].mxu0  ;;  %v2446_v19 = vpop.f32.mrb[84].mxu1  ;;  %v3259_v4 = vadd.f32 %v1549_v59, %v1319_v45  ;;  %v3262_v28 = vadd.f32 %v3067_v61, %v1346_v41  ;;  %v1122_v2 = vadd.f32 1e-06, %v3248_v39 }
 0x1c5   :  { %v800_v8 = vadd.f32 1e-06, %v799_v26  ;;  %v1159_v14 = vadd.f32 1e-06, %v2446_v19  ;;  %v801_v13 = vpop.f32.mrb[85].mxu0  ;;  %v1150_v58 = vpop.f32.mrb[85].mxu1 }
 0x1c6   :  { %v802_v36 = vadd.f32 1e-06, %v801_v13  ;;  %v1151_v44 = vadd.f32 1e-06, %v1150_v58  ;;  %v803_v27 = vpop.f32.mrb[86].mxu0  ;;  %v2447_v24 = vpop.f32.mrb[86].mxu1  ;;  %1591 = vadd.xlane.f32.xlu1 %v1590_v40  ;;  %v3264_v22 = vadd.f32 %v1553_v5, %v1322_v1  ;;  %v1328_v40 = vmul.f32 %v1114_v57, %v1114_v57 }
 0x1c7   :  { %v1323_v3 = vmul.f32 %v800_v8, %v800_v8  ;;  %v1361_v0 = vmul.f32 %v1159_v14, %v1159_v14  ;;  %v804_v18 = vadd.f32 1e-06, %v803_v27  ;;  %v1162_v37 = vadd.f32 1e-06, %v2447_v24  ;;  %v805_v52 = vpop.f32.mrb[87].mxu0  ;;  %v1153_v23 = vpop.f32.mrb[87].mxu1  ;;  %1491 = vadd.xlane.f32.xlu0 %v3220_v21 }
 0x1c8   :  { %v1324_v61 = vmul.f32 %v802_v36, %v802_v36  ;;  %v1355_v34 = vmul.f32 %v1151_v44, %v1151_v44  ;;  %v806_v63 = vadd.f32 1e-06, %v805_v52  ;;  %v1154_v6 = vadd.f32 1e-06, %v1153_v23 }
 0x1c9   :  { %v1326_v62 = vmul.f32 %v804_v18, %v804_v18  ;;  %v1364_v12 = vmul.f32 %v1162_v37, %v1162_v37  ;;  %v3268_v51 = vadd.f32 %v3087_v32, %v1361_v0  ;;  %v1119_v21 = vadd.f32 1e-06, %v3244_v25 }
 0x1ca   :  { %v1557_v54 = vadd.f32 %v1324_v61, %v1323_v3  ;;  %v1327_v45 = vmul.f32 %v806_v63, %v806_v63  ;;  %v1358_v31 = vmul.f32 %v1154_v6, %v1154_v6  ;;  %1583 = vadd.xlane.f32.xlu1 %v1582_v48  ;;  %v3271_v56 = vadd.f32 %v3079_v53, %v1355_v34 }
 0x1cb   :  { %1495 = vadd.xlane.f32.xlu0 %v3211_v50  ;;  %v3276_v59 = vadd.f32 %v3091_v55, %v1364_v12  ;;  %v1331_v0 = vmul.f32 %v1119_v21, %v1119_v21  ;;  %v1130_v63 = vadd.f32 1e-06, %v3246_v47 }
 0x1cc   :  { %v1561_v41 = vadd.f32 %v1327_v45, %v1326_v62  ;;  %v809_v32 = vpop.f32.mrb[88].mxu0  ;;  %v2450_v7 = vpop.f32.mrb[88].mxu1  ;;  %v3279_v1 = vadd.f32 %v1557_v54, %v1325_v43  ;;  %v3282_v48 = vadd.f32 %v3083_v20, %v1358_v31  ;;  %v1334_v43 = vmul.f32 %v1122_v2, %v1122_v2 }
 0x1cd   :  { %v810_v53 = vadd.f32 1e-06, %v809_v32  ;;  %v1175_v5 = vadd.f32 1e-06, %v2450_v7  ;;  %v811_v57 = vpop.f32.mrb[89].mxu0  ;;  %v1166_v26 = vpop.f32.mrb[89].mxu1 }
 0x1ce   :  { %v812_v25 = vadd.f32 1e-06, %v811_v57  ;;  %v1167_v19 = vadd.f32 1e-06, %v1166_v26  ;;  %v813_v50 = vpop.f32.mrb[90].mxu0  ;;  %v2451_v8 = vpop.f32.mrb[90].mxu1  ;;  %1595 = vadd.xlane.f32.xlu1 %v1594_v16  ;;  %v3284_v55 = vadd.f32 %v1561_v41, %v1328_v40 }
 0x1cf   :  { %v1329_v39 = vmul.f32 %v810_v53, %v810_v53  ;;  %v1373_v14 = vmul.f32 %v1175_v5, %v1175_v5  ;;  %v814_v13 = vadd.f32 1e-06, %v813_v50  ;;  %v1178_v58 = vadd.f32 1e-06, %v2451_v8  ;;  %v815_v36 = vpop.f32.mrb[91].mxu0  ;;  %v1169_v44 = vpop.f32.mrb[91].mxu1  ;;  %1499 = vadd.xlane.f32.xlu0 %v3217_v33 }
 0x1d0   :  { %v1330_v20 = vmul.f32 %v812_v25, %v812_v25  ;;  %v1367_v27 = vmul.f32 %v1167_v19, %v1167_v19  ;;  %v816_v24 = vadd.f32 1e-06, %v815_v36  ;;  %v1170_v3 = vadd.f32 1e-06, %v1169_v44 }
 0x1d1   :  { %v1332_v18 = vmul.f32 %v814_v13, %v814_v13  ;;  %v1376_v37 = vmul.f32 %v1178_v58, %v1178_v58  ;;  %v3288_v52 = vadd.f32 %v3103_v29, %v1373_v14  ;;  %v1127_v33 = vadd.f32 1e-06, %v3242_v10 }
 0x1d2   :  { %v1565_v16 = vadd.f32 %v1330_v20, %v1329_v39  ;;  %v1333_v23 = vmul.f32 %v816_v24, %v816_v24  ;;  %v1370_v61 = vmul.f32 %v1170_v3, %v1170_v3  ;;  %1551 = vadd.xlane.f32.xlu1 %v3259_v4  ;;  %v3292_v34 = vadd.f32 %v3095_v30, %v1367_v27 }
 0x1d3   :  { %1503 = vadd.xlane.f32.xlu0 %v3223_v60  ;;  %v3298_v6 = vadd.f32 %v3107_v9, %v1376_v37  ;;  %v1337_v19 = vmul.f32 %v1127_v33, %v1127_v33  ;;  %v1340_v36 = vmul.f32 %v1130_v63, %v1130_v63 }
 0x1d4   :  { %v1569_v29 = vadd.f32 %v1333_v23, %v1332_v18  ;;  %v819_v62 = vpop.f32.mrb[92].mxu0  ;;  %v2454_v12 = vpop.f32.mrb[92].mxu1  ;;  %v1566_v54 = vadd.f32 %v1565_v16, %v1331_v0  ;;  %v1618_v45 = vadd.f32 %v3099_v15, %v1370_v61 }
 0x1d5   :  { %v820_v4 = vadd.f32 1e-06, %v819_v62  ;;  %v1191_v31 = vadd.f32 1e-06, %v2454_v12  ;;  %v821_v30 = vpop.f32.mrb[93].mxu0  ;;  %v1182_v40 = vpop.f32.mrb[93].mxu1 }
 0x1d6   :  { %v822_v21 = vadd.f32 1e-06, %v821_v30  ;;  %v1183_v10 = vadd.f32 1e-06, %v1182_v40  ;;  %v823_v41 = vpop.f32.mrb[94].mxu0  ;;  %v2455_v47 = vpop.f32.mrb[94].mxu1  ;;  %1587 = vadd.xlane.f32.xlu1 %v3262_v28  ;;  %v1570_v60 = vadd.f32 %v1569_v29, %v1334_v43 }
 0x1d7   :  { %v1335_v9 = vmul.f32 %v820_v4, %v820_v4  ;;  %v1385_v32 = vmul.f32 %v1191_v31, %v1191_v31  ;;  %v824_v2 = vadd.f32 1e-06, %v823_v41  ;;  %v1194_v7 = vadd.f32 1e-06, %v2455_v47  ;;  %v825_v53 = vpop.f32.mrb[95].mxu0  ;;  %v1185_v5 = vpop.f32.mrb[95].mxu1  ;;  %1507 = vadd.xlane.f32.xlu0 %v3226_v38 }
 0x1d8   :  { %v1336_v15 = vmul.f32 %v822_v21, %v822_v21  ;;  %v1379_v57 = vmul.f32 %v1183_v10, %v1183_v10  ;;  %v826_v26 = vadd.f32 1e-06, %v825_v53  ;;  %v1186_v25 = vadd.f32 1e-06, %v1185_v5 }
 0x1d9   :  { %v1338_v50 = vmul.f32 %v824_v2, %v824_v2  ;;  %v1388_v8 = vmul.f32 %v1194_v7, %v1194_v7  ;;  %v1638_v39 = vadd.f32 %v3119_v11, %v1385_v32 }
 0x1da   :  { %v1573_v14 = vadd.f32 %v1336_v15, %v1335_v9  ;;  %v1339_v28 = vmul.f32 %v826_v26, %v826_v26  ;;  %v1382_v13 = vmul.f32 %v1186_v25, %v1186_v25  ;;  %1555 = vadd.xlane.f32.xlu1 %v3264_v22  ;;  %v1630_v58 = vadd.f32 %v3111_v42, %v1379_v57 }
 0x1db   :  { %1511 = vadd.xlane.f32.xlu0 %v3228_v35  ;;  %v1642_v38 = vadd.f32 %v3123_v49, %v1388_v8 }
 0x1dc   :  { %v1577_v44 = vadd.f32 %v1339_v28, %v1338_v50  ;;  %v1574_v20 = vadd.f32 %v1573_v14, %v1337_v19  ;;  %v1634_v27 = vadd.f32 %v3115_v17, %v1382_v13 }
 0x1de   :  { %1607 = vadd.xlane.f32.xlu1 %v3268_v51  ;;  %v1578_v24 = vadd.f32 %v1577_v44, %v1340_v36 }
 0x1df   :  { %1515 = vadd.xlane.f32.xlu0 %v3230_v46 }
 0x1e2   :  { %1599 = vadd.xlane.f32.xlu1 %v3271_v56 }
 0x1e6   :  { %1611 = vadd.xlane.f32.xlu1 %v3276_v59 }
 0x1ea   :  { %1559 = vadd.xlane.f32.xlu1 %v3279_v1 }
 0x1ee   :  { %1603 = vadd.xlane.f32.xlu1 %v3282_v48 }
 0x1f0   :  { %v3315_v42 = vpop.xlane.xlu0 %1399 }
 0x1f1   :  { %2514 = vrsqrt.f32 %v3315_v42  ;;  %vm1661_vm0 = vcmp.eq.f32.partialorder %v3315_v42, inf  ;;  %vm1663_vm1 = vcmp.eq.f32.partialorder %v3315_v42, 0.0  ;;  %v1664_v43 = vand.u32 2147483648, %v3315_v42 }
 0x1f2   :  { %1563 = vadd.xlane.f32.xlu1 %v3284_v55 }
 0x1f4   :  { %v3318_v11 = vpop.xlane.xlu0 %1391 }
 0x1f5   :  { %2516 = vrsqrt.f32 %v3318_v11  ;;  %vm1647_vm2 = vcmp.eq.f32.partialorder %v3318_v11, inf  ;;  %vm1649_vm3 = vcmp.eq.f32.partialorder %v3318_v11, 0.0 }
 0x1f6   :  { %1567 = vadd.xlane.f32.xlu1 %v1566_v54  ;;  %v1650_v54 = vand.u32 2147483648, %v3318_v11 }
 0x1f8   :  { %v3320_v17 = vpop.xlane.xlu0 %1403 }
 0x1f9   :  { %2518 = vrsqrt.f32 %v3320_v17  ;;  %vm1668_vm4 = vcmp.eq.f32.partialorder %v3320_v17, inf  ;;  %vm1670_vm5 = vcmp.eq.f32.partialorder %v3320_v17, 0.0  ;;  %v1671_v31 = vand.u32 2147483648, %v3320_v17 }
 0x1fa   :  { %1571 = vadd.xlane.f32.xlu1 %v1570_v60 }
 0x1fb   :  { %v2515_v37 = vpop.eup %2514 }
 0x1fc   :  { %v3322_v49 = vpop.xlane.xlu0 %1395  ;;  %v1660_v61 = vmul.f32 %v2515_v37, %v3315_v42 }
 0x1fd   :  { %2520 = vrsqrt.f32 %v3322_v49  ;;  %vm1654_vm6 = vcmp.eq.f32.partialorder %v3322_v49, inf  ;;  %vm1656_vm7 = vcmp.eq.f32.partialorder %v3322_v49, 0.0  ;;  %v1657_v10 = vand.u32 2147483648, %v3322_v49 }
 0x1fe   :  { %1575 = vadd.xlane.f32.xlu1 %v1574_v20  ;;  %v1662_v12 = vsel %vm1661_vm0, %v3315_v42, %v1660_v61 }
 0x1ff   :  { %v3392_v47 = vsel %vm1663_vm1, %v1664_v43, %v1662_v12 }
 0x200   :  { %v3324_v35 = vpop.xlane.xlu0 %1415 }
 0x201   :  { %2522 = vrsqrt.f32 %v3324_v35  ;;  %vm1689_vm8 = vcmp.eq.f32.partialorder %v3324_v35, inf  ;;  %vm1691_vm9 = vcmp.eq.f32.partialorder %v3324_v35, 0.0  ;;  %v1692_v2 = vand.u32 2147483648, %v3324_v35 }
 0x202   :  { %1579 = vadd.xlane.f32.xlu1 %v1578_v24 }
 0x204   :  { %v3326_v46 = vpop.xlane.xlu0 %1407 }
 0x205   :  { %2524 = vrsqrt.f32 %v3326_v46  ;;  %vm1675_vm10 = vcmp.eq.f32.partialorder %v3326_v46, inf  ;;  %vm1677_vm11 = vcmp.eq.f32.partialorder %v3326_v46, 0.0  ;;  %v1678_v26 = vand.u32 2147483648, %v3326_v46 }
 0x206   :  { %1615 = vadd.xlane.f32.xlu1 %v3292_v34 }
 0x208   :  { %v3329_v22 = vpop.xlane.xlu0 %1419 }
 0x209   :  { %2526 = vrsqrt.f32 %v3329_v22  ;;  %vm1696_vm12 = vcmp.eq.f32.partialorder %v3329_v22, inf  ;;  %vm1698_vm13 = vcmp.eq.f32.partialorder %v3329_v22, 0.0  ;;  %v1699_v19 = vand.u32 2147483648, %v3329_v22 }
 0x20a   :  { %1619 = vadd.xlane.f32.xlu1 %v1618_v45 }
 0x20c   :  { %v3331_v51 = vpop.xlane.xlu0 %1411 }
 0x20d   :  { %2528 = vrsqrt.f32 %v3331_v51  ;;  %vm1682_vm14 = vcmp.eq.f32.partialorder %v3331_v51, inf  ;;  %vm1684_vm15 = vcmp.eq.f32.partialorder %v3331_v51, 0.0 }
 0x20e   :  { %1623 = vadd.xlane.f32.xlu1 %v3288_v52  ;;  %v2517_v52 = vpop.eup %2516 }
 0x20f   :  { %v2519_v23 = vpop.eup %2518  ;;  %v1646_v34 = vmul.f32 %v2517_v52, %v3318_v11 }
 0x210   :  { %v3334_v56 = vpop.xlane.xlu0 %1431  ;;  %v2521_v63 = vpop.eup %2520  ;;  %v1667_v29 = vmul.f32 %v2519_v23, %v3320_v17 }
 0x211   :  { %v2523_v62 = vpop.eup %2522  ;;  %v1648_v4 = vsel %vm1647_vm2, %v3318_v11, %v1646_v34  ;;  %v1653_v30 = vmul.f32 %v2521_v63, %v3322_v49  ;;  %vm1717_vm1 = vcmp.eq.f32.partialorder %v3334_v56, inf  ;;  %vm2189_vm2 = vcmask 7168  }
 0x212   :  { %1627 = vadd.xlane.f32.xlu1 %v3298_v6  ;;  %v2525_v45 = vpop.eup %2524  ;;  %v1669_v60 = vsel %vm1668_vm4, %v3320_v17, %v1667_v29  ;;  %v1651_v9 = vsel %vm1649_vm3, %v1650_v54, %v1648_v4  ;;  %v1688_v32 = vmul.f32 %v2523_v62, %v3324_v35 }
 0x213   :  { %v2527_v21 = vpop.eup %2526  ;;  %v1655_v7 = vsel %vm1654_vm6, %v3322_v49, %v1653_v30  ;;  %v1674_v53 = vmul.f32 %v2525_v45, %v3326_v46  ;;  %v3410_v57 = vsel %vm1670_vm5, %v1671_v31, %v1669_v60  ;;  %v1720_v49 = vand.u32 2147483648, %v3334_v56 }
 0x214   :  { %v3337_v59 = vpop.xlane.xlu0 %1423  ;;  %v1695_v5 = vmul.f32 %v2527_v21, %v3329_v22  ;;  %v1690_v14 = vsel %vm1689_vm8, %v3324_v35, %v1688_v32  ;;  %vm1719_vm6 = vcmp.eq.f32.partialorder %v3334_v56, 0.0 }
 0x215   :  { %v1676_v28 = vsel %vm1675_vm10, %v3326_v46, %v1674_v53  ;;  %v3442_v24 = vsel %vm1691_vm9, %v1692_v2, %v1690_v14  ;;  %vm1703_vm4 = vcmp.eq.f32.partialorder %v3337_v59, inf  ;;  %v1706_v23 = vand.u32 2147483648, %v3337_v59 }
 0x216   :  { %1631 = vadd.xlane.f32.xlu1 %v1630_v58  ;;  %v1697_v13 = vsel %vm1696_vm12, %v3329_v22, %v1695_v5  ;;  %v1685_v58 = vand.u32 2147483648, %v3331_v51  ;;  %v3449_v17 = vsel %vm1677_vm11, %v1678_v26, %v1676_v28  ;;  %vm1705_vm8 = vcmp.eq.f32.partialorder %v3337_v59, 0.0 }
 0x217   :  { %v2529_v25 = vpop.eup %2528  ;;  %v3455_v52 = vsel %vm1698_vm13, %v1699_v19, %v1697_v13 }
 0x218   :  { %v3339_v1 = vpop.xlane.xlu0 %1435  ;;  %v1681_v44 = vmul.f32 %v2529_v25, %v3331_v51 }
 0x219   :  { %v1727_v45 = vand.u32 2147483648, %v3339_v1  ;;  %vm1724_vm9 = vcmp.eq.f32.partialorder %v3339_v1, inf }
 0x21a   :  { %1635 = vadd.xlane.f32.xlu1 %v1634_v27  ;;  %v1683_v63 = vsel %vm1682_vm14, %v3331_v51, %v1681_v44  ;;  %vm1726_vm14 = vcmp.eq.f32.partialorder %v3339_v1, 0.0 }
 0x21b   :  { %v3479_v30 = vsel %vm1684_vm15, %v1685_v58, %v1683_v63 }
 0x21c   :  { %v3341_v48 = vpop.xlane.xlu0 %1427 }
 0x21d   :  { %v1713_v51 = vand.u32 2147483648, %v3341_v48  ;;  %vm1710_vm15 = vcmp.eq.f32.partialorder %v3341_v48, inf }
 0x21e   :  { %1639 = vadd.xlane.f32.xlu1 %v1638_v39  ;;  %v1658_v39 = vsel %vm1656_vm7, %v1657_v10, %v1655_v7 }
 0x220   :  { %v3343_v55 = vpop.xlane.xlu0 %1447 }
 0x222   :  { %1643 = vadd.xlane.f32.xlu1 %v1642_v38 }
 0x224   :  { %v3345_v3 = vpop.xlane.xlu0 %1439 }
 0x228   :  { %v3350_v0 = vpop.xlane.xlu0 %1451 }
 0x22c   :  { %v3354_v18 = vpop.xlane.xlu0 %1443 }
 0x230   :  { %v3358_v16 = vpop.xlane.xlu0 %1463 }
 0x233   :  { %v3363_v33 = vpop.xlane.xlu1 %1519 }
 0x234   :  { %2530 = vrsqrt.f32 %v3363_v33  ;;  %v3368_v6 = vpop.xlane.xlu0 %1455  ;;  %vm1871_vm0 = vcmp.eq.f32.partialorder %v3363_v33, inf  ;;  %v1874_v20 = vand.u32 2147483648, %v3363_v33  ;;  %vm1873_vm3 = vcmp.eq.f32.partialorder %v3363_v33, 0.0 }
 0x235   :  { %2532 = vrsqrt.f32 %v3334_v56 }
 0x237   :  { %v3382_v40 = vpop.xlane.xlu1 %1523 }
 0x238   :  { %2534 = vrsqrt.f32 %v3382_v40  ;;  %v3388_v41 = vpop.xlane.xlu0 %1467  ;;  %vm1878_vm5 = vcmp.eq.f32.partialorder %v3382_v40, inf  ;;  %v1881_v43 = vand.u32 2147483648, %v3382_v40  ;;  %vm1880_vm7 = vcmp.eq.f32.partialorder %v3382_v40, 0.0 }
 0x239   :  { %2536 = vrsqrt.f32 %v3337_v59 }
 0x23b   :  { %v3406_v15 = vpop.xlane.xlu1 %1527 }
 0x23c   :  { %2538 = vrsqrt.f32 %v3406_v15  ;;  %v3419_v50 = vpop.xlane.xlu0 %1459  ;;  %vm1885_vm10 = vcmp.eq.f32.partialorder %v3406_v15, inf  ;;  %vm1887_vm11 = vcmp.eq.f32.partialorder %v3406_v15, 0.0 }
 0x23d   :  { %2540 = vrsqrt.f32 %v3339_v1 }
 0x23e   :  { %v2531_v8 = vpop.eup %2530 }
 0x23f   :  { %v1870_v38 = vmul.f32 %v2531_v8, %v3363_v33  ;;  %v3434_v36 = vpop.xlane.xlu1 %1531  ;;  %v2533_v27 = vpop.eup %2532 }
 0x240   :  { %2542 = vrsqrt.f32 %v3434_v36  ;;  %v1716_v12 = vmul.f32 %v2533_v27, %v3334_v56  ;;  %vm1892_vm12 = vcmp.eq.f32.partialorder %v3434_v36, inf  ;;  %vm1894_vm13 = vcmp.eq.f32.partialorder %v3434_v36, 0.0 }
 0x241   :  { %v1872_v42 = vsel %vm1871_vm0, %v3363_v33, %v1870_v38  ;;  %v3459_v33 = vpop.xlane.xlu0 %1479  ;;  %v1895_v13 = vand.u32 2147483648, %v3434_v36  ;;  %v1748_v27 = vand.u32 2147483648, %v3343_v55  ;;  %vm1745_vm0 = vcmp.eq.f32.partialorder %v3343_v55, inf }
 0x242   :  { %v2535_v11 = vpop.eup %2534  ;;  %v1875_v37 = vsel %vm1873_vm3, %v1874_v20, %v1872_v42  ;;  %v1718_v5 = vsel %vm1717_vm1, %v3334_v56, %v1716_v12 }
 0x243   :  { %v2537_v35 = vpop.eup %2536  ;;  %v2093_v61 = vsub.f32 %v1651_v9, %v1875_v37  ;;  %v1877_v34 = vmul.f32 %v2535_v11, %v3382_v40  ;;  %v3461_v46 = vpop.xlane.xlu1 %1535  ;;  %v1888_v9 = vand.u32 2147483648, %v3406_v15  ;;  %v3516_v20 = vsel %vm1719_vm6, %v1720_v49, %v1718_v5 }
 0x244   :  { %2544 = vrsqrt.f32 %v3461_v46  ;;  %v1702_v54 = vmul.f32 %v2537_v35, %v3337_v59  ;;  %vm1899_vm1 = vcmp.eq.f32.partialorder %v3461_v46, inf  ;;  %vm1901_vm3 = vcmp.eq.f32.partialorder %v3461_v46, 0.0 }
 0x245   :  { %2546 = vrsqrt.f32 %v3341_v48  ;;  %v2125_v22 = vadd.f32 1.0, %v2093_v61  ;;  %v1879_v29 = vsel %vm1878_vm5, %v3382_v40, %v1877_v34  ;;  %v3492_v7 = vpop.xlane.xlu0 %1471  ;;  %vm1747_vm5 = vcmp.eq.f32.partialorder %v3343_v55, 0.0 }
 0x246   :  { %v2539_v62 = vpop.eup %2538  ;;  %v1882_v4 = vsel %vm1880_vm7, %v1881_v43, %v1879_v29  ;;  %2548 = vrsqrt.f32 %v3343_v55  ;;  %v1704_v26 = vsel %vm1703_vm4, %v3337_v59, %v1702_v54  ;;  %v1902_v59 = vand.u32 2147483648, %v3461_v46 }
 0x247   :  { %v2541_v31 = vpop.eup %2540  ;;  %v2094_v40 = vsub.f32 %v1658_v39, %v1882_v4  ;;  %v1884_v21 = vmul.f32 %v2539_v62, %v3406_v15  ;;  %v3484_v10 = vpop.xlane.xlu1 %1539  ;;  %v2157_v60 = vmax.f32 %v2125_v22, 0.0  ;;  %v3524_v35 = vsel %vm1705_vm8, %v1706_v23, %v1704_v26 }
 0x248   :  { %2550 = vrsqrt.f32 %v3484_v10  ;;  %v1723_v25 = vmul.f32 %v2541_v31, %v3339_v1  ;;  %vm1712_vm4 = vcmp.eq.f32.partialorder %v3341_v48, 0.0  ;;  %vm1906_vm6 = vcmp.eq.f32.partialorder %v3484_v10, inf }
 0x249   :  { %v2126_v32 = vadd.f32 1.0, %v2094_v40  ;;  %v1886_v2 = vsel %vm1885_vm10, %v3406_v15, %v1884_v21  ;;  %2552 = vrsqrt.f32 %v3345_v3  ;;  %v2190_v28 = vsel %vm2189_vm2, %v2157_v60, 0.0  ;;  %v3529_v61 = vpop.xlane.xlu0 %1483 }
 0x24a   :  { %v2543_v53 = vpop.eup %2542  ;;  %v1889_v19 = vsel %vm1887_vm11, %v1888_v9, %v1886_v2  ;;  %v1725_v63 = vsel %vm1724_vm9, %v3339_v1, %v1723_v25  ;;  %v1909_v60 = vand.u32 2147483648, %v3484_v10  ;;  %vm1731_vm7 = vcmp.eq.f32.partialorder %v3345_v3, inf }
 0x24b   :  { %v2158_v8 = vmax.f32 %v2126_v32, 0.0  ;;  %v2095_v39 = vsub.f32 %v3392_v47, %v1889_v19  ;;  %v1891_v15 = vmul.f32 %v2543_v53, %v3434_v36  ;;  %v3504_v14 = vpop.xlane.xlu1 %1543  ;;  %vm1908_vm8 = vcmp.eq.f32.partialorder %v3484_v10, 0.0 }
 0x24c   :  { %2554 = vrsqrt.f32 %v3504_v14  ;;  %v3565_v5 = vsel %vm1726_vm14, %v1727_v45, %v1725_v63  ;;  %v1734_v26 = vand.u32 2147483648, %v3345_v3  ;;  %vm1733_vm9 = vcmp.eq.f32.partialorder %v3345_v3, 0.0 }
 0x24d   :  { %v2191_v58 = vsel %vm2189_vm2, %v2158_v8, 0.0  ;;  %v2127_v38 = vadd.f32 1.0, %v2095_v39  ;;  %v1893_v44 = vsel %vm1892_vm12, %v3434_v36, %v1891_v15  ;;  %2556 = vrsqrt.f32 %v3350_v0  ;;  %v3559_v53 = vpop.xlane.xlu0 %1475 }
 0x24e   :  { %v2545_v47 = vpop.eup %2544  ;;  %v2192_v42 = vadd.f32 %v2191_v58, %v2190_v28  ;;  %v1896_v11 = vsel %vm1894_vm13, %v1895_v13, %v1893_v44  ;;  %2558 = vrsqrt.f32 %v3354_v18  ;;  %vm1752_vm10 = vcmp.eq.f32.partialorder %v3350_v0, inf }
 0x24f   :  { %v2547_v37 = vpop.eup %2546  ;;  %v2159_v36 = vmax.f32 %v2127_v38, 0.0  ;;  %v2096_v56 = vsub.f32 %v3410_v57, %v1896_v11  ;;  %v1898_v49 = vmul.f32 %v2545_v47, %v3461_v46  ;;  %v3531_v34 = vpop.xlane.xlu1 %1547  ;;  %2560 = vrsqrt.f32 %v3358_v16 }
 0x250   :  { %v2549_v23 = vpop.eup %2548  ;;  %v1709_v62 = vmul.f32 %v2547_v37, %v3341_v48  ;;  %2562 = vrsqrt.f32 %v3531_v34  ;;  %vm1913_vm11 = vcmp.eq.f32.partialorder %v3504_v14, inf  ;;  %vm1915_vm12 = vcmp.eq.f32.partialorder %v3504_v14, 0.0 }
 0x251   :  { %v2193_v43 = vsel %vm2189_vm2, %v2159_v36, 0.0  ;;  %v2128_v57 = vadd.f32 1.0, %v2096_v56  ;;  %v1900_v22 = vsel %vm1899_vm1, %v3461_v46, %v1898_v49  ;;  %v1744_v46 = vmul.f32 %v2549_v23, %v3343_v55  ;;  %v3592_v56 = vpop.xlane.xlu0 %1487 }
 0x252   :  { %v2551_v29 = vpop.eup %2550  ;;  %v2194_v12 = vadd.f32 %v2193_v43, %v2192_v42  ;;  %v1903_v54 = vsel %vm1901_vm3, %v1902_v59, %v1900_v22  ;;  %v1711_v39 = vsel %vm1710_vm15, %v3341_v48, %v1709_v62  ;;  %2564 = vrsqrt.f32 %v3368_v6 }
 0x253   :  { %v2160_v4 = vmax.f32 %v2128_v57, 0.0  ;;  %v2097_v31 = vsub.f32 %v3449_v17, %v1903_v54  ;;  %v1905_v40 = vmul.f32 %v2551_v29, %v3484_v10  ;;  %v3548_v21 = vpop.xlane.xlu1 %1591  ;;  %v2553_v9 = vpop.eup %2552  ;;  %v1746_v1 = vsel %vm1745_vm0, %v3343_v55, %v1744_v46 }
 0x254   :  { %v1730_v45 = vmul.f32 %v2553_v9, %v3345_v3  ;;  %2566 = vrsqrt.f32 %v3388_v41  ;;  %vm1754_vm13 = vcmp.eq.f32.partialorder %v3350_v0, 0.0  ;;  %v1755_v11 = vand.u32 2147483648, %v3350_v0 }
 0x255   :  { %v2195_v32 = vsel %vm2189_vm2, %v2160_v4, 0.0  ;;  %v2129_v17 = vadd.f32 1.0, %v2097_v31  ;;  %v1907_v2 = vsel %vm1906_vm6, %v3484_v10, %v1905_v40  ;;  %2568 = vrsqrt.f32 %v3419_v50 }
 0x256   :  { %v2196_v25 = vadd.f32 %v2195_v32, %v2194_v12  ;;  %v1910_v19 = vsel %vm1908_vm8, %v1909_v60, %v1907_v2  ;;  %v2555_v8 = vpop.eup %2554  ;;  %2570 = vrsqrt.f32 %v3459_v33  ;;  %v3600_v59 = vsel %vm1712_vm4, %v1713_v51, %v1711_v39  ;;  %v3638_v32 = vpop.xlane.xlu0 %1491 }
 0x257   :  { %v2161_v10 = vmax.f32 %v2129_v17, 0.0  ;;  %v2098_v15 = vsub.f32 %v3479_v30, %v1910_v19  ;;  %v3573_v28 = vpop.xlane.xlu1 %1583  ;;  %v1912_v13 = vmul.f32 %v2555_v8, %v3504_v14  ;;  %v1916_v30 = vand.u32 2147483648, %v3504_v14  ;;  %v2557_v44 = vpop.eup %2556 }
 0x258   :  { %v2559_v63 = vpop.eup %2558  ;;  %vm1738_vm14 = vcmp.eq.f32.partialorder %v3354_v18, inf  ;;  %v3609_v57 = vsel %vm1747_vm5, %v1748_v27, %v1746_v1  ;;  %v1751_v22 = vmul.f32 %v2557_v44, %v3350_v0  ;;  %2572 = vrsqrt.f32 %v3492_v7 }
 0x259   :  { %v2197_v58 = vsel %vm2189_vm2, %v2161_v10, 0.0  ;;  %v2130_v38 = vadd.f32 1.0, %v2098_v15  ;;  %v1914_v42 = vsel %vm1913_vm11, %v3504_v14, %v1912_v13  ;;  %v1741_v14 = vand.u32 2147483648, %v3354_v18  ;;  %v2561_v43 = vpop.eup %2560 }
 0x25a   :  { %v2198_v47 = vadd.f32 %v2197_v58, %v2196_v25  ;;  %v1917_v36 = vsel %vm1915_vm12, %v1916_v30, %v1914_v42  ;;  %v2563_v51 = vpop.eup %2562  ;;  %v1732_v29 = vsel %vm1731_vm7, %v3345_v3, %v1730_v45  ;;  %vm1740_vm15 = vcmp.eq.f32.partialorder %v3354_v18, 0.0  ;;  %v3672_v42 = vpop.xlane.xlu0 %1495 }
 0x25b   :  { %v2162_v37 = vmax.f32 %v2130_v38, 0.0  ;;  %v3594_v49 = vpop.xlane.xlu1 %1595  ;;  %v2099_v23 = vsub.f32 %v3442_v24, %v1917_v36  ;;  %2574 = vrsqrt.f32 %v3529_v61  ;;  %v1737_v55 = vmul.f32 %v2559_v63, %v3354_v18 }
 0x25c   :  { %vm1773_vm0 = vcmp.eq.f32.partialorder %v3358_v16, inf  ;;  %v1776_v27 = vand.u32 2147483648, %v3358_v16  ;;  %v1919_v12 = vmul.f32 %v2563_v51, %v3531_v34  ;;  %vm1775_vm1 = vcmp.eq.f32.partialorder %v3358_v16, 0.0  ;;  %v2565_v40 = vpop.eup %2564 }
 0x25d   :  { %v2199_v48 = vsel %vm2189_vm2, %v2162_v37, 0.0  ;;  %v2131_v62 = vadd.f32 1.0, %v2099_v23  ;;  %vm1920_vm3 = vcmp.eq.f32.partialorder %v3531_v34, inf  ;;  %v1923_v31 = vand.u32 2147483648, %v3531_v34 }
 0x25e   :  { %v2200_v24 = vadd.f32 %v2199_v48, %v2198_v47  ;;  %2576 = vrsqrt.f32 %v3548_v21  ;;  %v3631_v46 = vsel %vm1733_vm9, %v1734_v26, %v1732_v29  ;;  %v1753_v60 = vsel %vm1752_vm10, %v3350_v0, %v1751_v22  ;;  %v2567_v17 = vpop.eup %2566 }
 0x25f   :  { %v3623_v54 = vpop.xlane.xlu1 %1551  ;;  %v2163_v4 = vmax.f32 %v2131_v62, 0.0  ;;  %v1921_v9 = vsel %vm1920_vm3, %v3531_v34, %v1919_v12  ;;  %vm1922_vm4 = vcmp.eq.f32.partialorder %v3531_v34, 0.0  ;;  %v1772_v2 = vmul.f32 %v2561_v43, %v3358_v16  ;;  %v2569_v34 = vpop.eup %2568 }
 0x260   :  { %vm1759_vm5 = vcmp.eq.f32.partialorder %v3368_v6, inf  ;;  %v1924_v3 = vsel %vm1922_vm4, %v1923_v31, %v1921_v9  ;;  %vm1761_vm6 = vcmp.eq.f32.partialorder %v3368_v6, 0.0  ;;  %2578 = vrsqrt.f32 %v3573_v28  ;;  %v2571_v1 = vpop.eup %2570 }
 0x261   :  { %v2201_v25 = vsel %vm2189_vm2, %v2163_v4, 0.0  ;;  %v2100_v19 = vsub.f32 %v3455_v52, %v1924_v3  ;;  %v3650_v39 = vsel %vm1754_vm13, %v1755_v11, %v1753_v60  ;;  %v1739_v10 = vsel %vm1738_vm14, %v3354_v18, %v1737_v55 }
 0x262   :  { %v2202_v26 = vadd.f32 %v2201_v25, %v2200_v24  ;;  %v1762_v15 = vand.u32 2147483648, %v3368_v6  ;;  %vm1780_vm7 = vcmp.eq.f32.partialorder %v3388_v41, inf  ;;  %v1758_v52 = vmul.f32 %v2565_v40, %v3368_v6  ;;  %v2573_v38 = vpop.eup %2572 }
 0x263   :  { %v3646_v8 = vpop.xlane.xlu1 %1587  ;;  %vm1782_vm8 = vcmp.eq.f32.partialorder %v3388_v41, 0.0  ;;  %2580 = vrsqrt.f32 %v3559_v53  ;;  %v2132_v45 = vadd.f32 1.0, %v2100_v19  ;;  %v1774_v0 = vsel %vm1773_vm0, %v3358_v16, %v1772_v2 }
 0x264   :  { %v1779_v13 = vmul.f32 %v2567_v17, %v3388_v41  ;;  %v1783_v58 = vand.u32 2147483648, %v3388_v41  ;;  %2582 = vrsqrt.f32 %v3594_v49  ;;  %v3668_v30 = vsel %vm1740_vm15, %v1741_v14, %v1739_v10 }
 0x265   :  { %v1765_v44 = vmul.f32 %v2569_v34, %v3419_v50  ;;  %v2164_v47 = vmax.f32 %v2132_v45, 0.0  ;;  %2584 = vrsqrt.f32 %v3592_v56  ;;  %v2575_v37 = vpop.eup %2574  ;;  %vm1766_vm9 = vcmp.eq.f32.partialorder %v3419_v50, inf }
 0x266   :  { %vm1768_vm10 = vcmp.eq.f32.partialorder %v3419_v50, 0.0  ;;  %v1769_v36 = vand.u32 2147483648, %v3419_v50  ;;  %v1800_v18 = vmul.f32 %v2571_v1, %v3459_v33  ;;  %v3682_v63 = vsel %vm1775_vm1, %v1776_v27, %v1774_v0 }
 0x267   :  { %v3674_v11 = vpop.xlane.xlu1 %1555  ;;  %v1760_v14 = vsel %vm1759_vm5, %v3368_v6, %v1758_v52  ;;  %vm1801_vm11 = vcmp.eq.f32.partialorder %v3459_v33, inf  ;;  %v2203_v23 = vsel %vm2189_vm2, %v2164_v47, 0.0  ;;  %v1781_v22 = vsel %vm1780_vm7, %v3388_v41, %v1779_v13  ;;  %v3716_v6 = vpop.xlane.xlu0 %1499 }
 0x268   :  { %v2577_v43 = vpop.eup %2576  ;;  %vm1803_vm12 = vcmp.eq.f32.partialorder %v3459_v33, 0.0  ;;  %v1786_v48 = vmul.f32 %v2573_v38, %v3492_v7  ;;  %v3694_v16 = vadd.f32 %v2203_v23, %v2202_v26  ;;  %v1767_v51 = vsel %vm1766_vm9, %v3419_v50, %v1765_v44 }
 0x269   :  { %v1804_v29 = vand.u32 2147483648, %v3459_v33  ;;  %v1807_v24 = vmul.f32 %v2575_v37, %v3529_v61  ;;  %2586 = vrsqrt.f32 %v3638_v32  ;;  %v3704_v55 = vsel %vm1761_vm6, %v1762_v15, %v1760_v14 }
 0x26a   :  { %v1802_v27 = vsel %vm1801_vm11, %v3459_v33, %v1800_v18  ;;  %vm1787_vm13 = vcmp.eq.f32.partialorder %v3492_v7, inf  ;;  %2588 = vrsqrt.f32 %v3623_v54  ;;  %v2579_v12 = vpop.eup %2578  ;;  %v3711_v4 = vsel %vm1782_vm8, %v1783_v58, %v1781_v22 }
 0x26b   :  { %v3700_v62 = vpop.xlane.xlu1 %1607  ;;  %vm1789_vm14 = vcmp.eq.f32.partialorder %v3492_v7, 0.0  ;;  %v1790_v31 = vand.u32 2147483648, %v3492_v7  ;;  %v1996_v40 = vmul.f32 %v2577_v43, %v3548_v21  ;;  %v3720_v60 = vsel %vm1768_vm10, %v1769_v36, %v1767_v51  ;;  %v3756_v45 = vpop.xlane.xlu0 %1503 }
 0x26c   :  { %v1788_v9 = vsel %vm1787_vm13, %v3492_v7, %v1786_v48  ;;  %vm1808_vm15 = vcmp.eq.f32.partialorder %v3529_v61, inf  ;;  %vm1810_vm0 = vcmp.eq.f32.partialorder %v3529_v61, 0.0  ;;  %v3727_v17 = vsel %vm1803_vm12, %v1804_v29, %v1802_v27 }
 0x26d   :  { %v2581_v41 = vpop.eup %2580  ;;  %v1809_v2 = vsel %vm1808_vm15, %v3529_v61, %v1807_v24  ;;  %v1811_v25 = vand.u32 2147483648, %v3529_v61  ;;  %2590 = vrsqrt.f32 %v3672_v42  ;;  %vm1794_vm1 = vcmp.eq.f32.partialorder %v3559_v53, inf }
 0x26e   :  { %v2583_v3 = vpop.eup %2582  ;;  %vm1796_vm3 = vcmp.eq.f32.partialorder %v3559_v53, 0.0  ;;  %vm1997_vm4 = vcmp.eq.f32.partialorder %v3548_v21, inf  ;;  %v1982_v26 = vmul.f32 %v2579_v12, %v3573_v28  ;;  %v3740_v19 = vsel %vm1789_vm14, %v1790_v31, %v1788_v9 }
 0x26f   :  { %v3732_v50 = vpop.xlane.xlu1 %1599  ;;  %v2585_v33 = vpop.eup %2584  ;;  %v1797_v34 = vand.u32 2147483648, %v3559_v53  ;;  %v1998_v10 = vsel %vm1997_vm4, %v3548_v21, %v1996_v40  ;;  %2592 = vrsqrt.f32 %v3716_v6  ;;  %v3747_v15 = vsel %vm1810_vm0, %v1811_v25, %v1809_v2 }
 0x270   :  { %v1793_v1 = vmul.f32 %v2581_v41, %v3559_v53  ;;  %vm1815_vm5 = vcmp.eq.f32.partialorder %v3592_v56, inf  ;;  %v2000_v52 = vand.u32 2147483648, %v3548_v21  ;;  %vm1817_vm6 = vcmp.eq.f32.partialorder %v3592_v56, 0.0  ;;  %v3794_v12 = vpop.xlane.xlu0 %1507 }
 0x271   :  { %vm1999_vm7 = vcmp.eq.f32.partialorder %v3548_v21, 0.0  ;;  %vm1983_vm8 = vcmp.eq.f32.partialorder %v3573_v28, inf  ;;  %v2003_v7 = vmul.f32 %v2583_v3, %v3594_v49  ;;  %v1814_v61 = vmul.f32 %v2585_v33, %v3592_v56 }
 0x272   :  { %v2001_v13 = vsel %vm1999_vm7, %v2000_v52, %v1998_v10  ;;  %v1984_v58 = vsel %vm1983_vm8, %v3573_v28, %v1982_v26  ;;  %2594 = vrsqrt.f32 %v3674_v11  ;;  %v1818_v44 = vand.u32 2147483648, %v3592_v56 }
 0x273   :  { %v3758_v0 = vpop.xlane.xlu1 %1611  ;;  %v2587_v38 = vpop.eup %2586  ;;  %vm1822_vm9 = vcmp.eq.f32.partialorder %v3638_v32, inf  ;;  %v1986_v21 = vand.u32 2147483648, %v3573_v28  ;;  %2596 = vrsqrt.f32 %v3646_v8  ;;  %v1795_v37 = vsel %vm1794_vm1, %v3559_v53, %v1793_v1 }
 0x274   :  { %v2589_v47 = vpop.eup %2588  ;;  %vm1985_vm10 = vcmp.eq.f32.partialorder %v3573_v28, 0.0  ;;  %vm2004_vm11 = vcmp.eq.f32.partialorder %v3594_v49, inf  ;;  %2598 = vrsqrt.f32 %v3756_v45  ;;  %v2111_v36 = vsub.f32 %v3682_v63, %v2001_v13 }
 0x275   :  { %vm1824_vm12 = vcmp.eq.f32.partialorder %v3638_v32, 0.0  ;;  %v1987_v18 = vsel %vm1985_vm10, %v1986_v21, %v1984_v58  ;;  %v2005_v14 = vsel %vm2004_vm11, %v3594_v49, %v2003_v7  ;;  %v1816_v43 = vsel %vm1815_vm5, %v3592_v56, %v1814_v61 }
 0x276   :  { %v1821_v22 = vmul.f32 %v2587_v38, %v3638_v32  ;;  %v1825_v28 = vand.u32 2147483648, %v3638_v32  ;;  %v2007_v48 = vand.u32 2147483648, %v3594_v49  ;;  %v3786_v63 = vsel %vm1796_vm3, %v1797_v34, %v1795_v37  ;;  %v3832_v38 = vpop.xlane.xlu0 %1511 }
 0x277   :  { %v3776_v23 = vpop.xlane.xlu1 %1559  ;;  %v2591_v51 = vpop.eup %2590  ;;  %vm2006_vm13 = vcmp.eq.f32.partialorder %v3594_v49, 0.0  ;;  %v1926_v29 = vmul.f32 %v2589_v47, %v3623_v54  ;;  %v2109_v24 = vsub.f32 %v3704_v55, %v1987_v18  ;;  %vm1829_vm14 = vcmp.eq.f32.partialorder %v3672_v42, inf }
 0x278   :  { %2600 = vrsqrt.f32 %v3776_v23  ;;  %vm1831_vm15 = vcmp.eq.f32.partialorder %v3672_v42, 0.0  ;;  %v2008_v27 = vsel %vm2006_vm13, %v2007_v48, %v2005_v14  ;;  %v3798_v53 = vsel %vm1817_vm6, %v1818_v44, %v1816_v43 }
 0x279   :  { %v2593_v31 = vpop.eup %2592  ;;  %v2143_v40 = vadd.f32 1.0, %v2111_v36  ;;  %v1832_v49 = vand.u32 2147483648, %v3672_v42  ;;  %vm1836_vm0 = vcmp.eq.f32.partialorder %v3716_v6, inf  ;;  %v1823_v55 = vsel %vm1822_vm9, %v3638_v32, %v1821_v22 }
 0x27a   :  { %v1828_v41 = vmul.f32 %v2591_v51, %v3672_v42  ;;  %vm1838_vm1 = vcmp.eq.f32.partialorder %v3716_v6, 0.0  ;;  %vm1927_vm3 = vcmp.eq.f32.partialorder %v3623_v54, inf  ;;  %v2112_v56 = vsub.f32 %v3711_v4, %v2008_v27 }
 0x27b   :  { %v3802_v9 = vpop.xlane.xlu1 %1603  ;;  %v1839_v2 = vand.u32 2147483648, %v3716_v6  ;;  %v1928_v25 = vsel %vm1927_vm3, %v3623_v54, %v1926_v29  ;;  %2602 = vrsqrt.f32 %v3794_v12  ;;  %v2141_v26 = vadd.f32 1.0, %v2109_v24 }
 0x27c   :  { %v2595_v3 = vpop.eup %2594  ;;  %v1835_v33 = vmul.f32 %v2593_v31, %v3716_v6  ;;  %vm1929_vm4 = vcmp.eq.f32.partialorder %v3623_v54, 0.0  ;;  %v1930_v34 = vand.u32 2147483648, %v3623_v54  ;;  %v2175_v1 = vmax.f32 %v2143_v40, 0.0 }
 0x27d   :  { %v2597_v10 = vpop.eup %2596  ;;  %v3819_v52 = vsel %vm1824_vm12, %v1825_v28, %v1823_v55  ;;  %vm1843_vm5 = vcmp.eq.f32.partialorder %v3756_v45, inf  ;;  %v1846_v4 = vand.u32 2147483648, %v3756_v45  ;;  %v1830_v13 = vsel %vm1829_vm14, %v3672_v42, %v1828_v41  ;;  %v3874_v55 = vpop.xlane.xlu0 %1515 }
 0x27e   :  { %v2599_v61 = vpop.eup %2598  ;;  %v1931_v58 = vsel %vm1929_vm4, %v1930_v34, %v1928_v25  ;;  %vm1990_vm6 = vcmp.eq.f32.partialorder %v3646_v8, inf  ;;  %v2144_v54 = vadd.f32 1.0, %v2112_v56  ;;  %vm1992_vm7 = vcmp.eq.f32.partialorder %v3646_v8, 0.0 }
 0x27f   :  { %v3823_v7 = vpop.xlane.xlu1 %1563  ;;  %v1933_v32 = vmul.f32 %v2595_v3, %v3674_v11  ;;  %v2173_v44 = vmax.f32 %v2141_v26, 0.0  ;;  %v1837_v21 = vsel %vm1836_vm0, %v3716_v6, %v1835_v33  ;;  %v1989_v47 = vmul.f32 %v2597_v10, %v3646_v8 }
 0x280   :  { %2604 = vrsqrt.f32 %v3823_v7  ;;  %v1993_v37 = vand.u32 2147483648, %v3646_v8  ;;  %v3841_v18 = vsel %vm2189_vm2, %v2175_v1, 0.0  ;;  %v3845_v14 = vsel %vm1831_vm15, %v1832_v49, %v1830_v13 }
 0x281   :  { %2606 = vrsqrt.f32 %v3700_v62  ;;  %v2101_v43 = vsub.f32 %v3524_v35, %v1931_v58  ;;  %v1842_v22 = vmul.f32 %v2599_v61, %v3756_v45  ;;  %v1853_v48 = vand.u32 2147483648, %v3794_v12 }
 0x282   :  { %v2601_v36 = vpop.eup %2600  ;;  %vm1934_vm8 = vcmp.eq.f32.partialorder %v3674_v11, inf  ;;  %v2176_v29 = vmax.f32 %v2144_v54, 0.0  ;;  %v3857_v42 = vsel %vm1838_vm1, %v1839_v2, %v1837_v21  ;;  %vm1850_vm9 = vcmp.eq.f32.partialorder %v3794_v12, inf }
 0x283   :  { %v3849_v28 = vpop.xlane.xlu1 %1567  ;;  %v1940_v51 = vmul.f32 %v2601_v36, %v3776_v23  ;;  %v1935_v35 = vsel %vm1934_vm8, %v3674_v11, %v1933_v32  ;;  %vm1936_vm10 = vcmp.eq.f32.partialorder %v3674_v11, 0.0  ;;  %v3863_v24 = vsel %vm2189_vm2, %v2173_v44, 0.0 }
 0x284   :  { %2608 = vrsqrt.f32 %v3849_v28  ;;  %v1991_v27 = vsel %vm1990_vm6, %v3646_v8, %v1989_v47  ;;  %v1937_v31 = vand.u32 2147483648, %v3674_v11  ;;  %vm1941_vm11 = vcmp.eq.f32.partialorder %v3776_v23, inf }
 0x285   :  { %v2603_v6 = vpop.eup %2602  ;;  %v2133_v40 = vadd.f32 1.0, %v2101_v43  ;;  %v1844_v49 = vsel %vm1843_vm5, %v3756_v45, %v1842_v22  ;;  %2610 = vrsqrt.f32 %v3832_v38  ;;  %v1942_v41 = vsel %vm1941_vm11, %v3776_v23, %v1940_v51 }
 0x286   :  { %v1938_v2 = vsel %vm1936_vm10, %v1937_v31, %v1935_v35  ;;  %v1860_v25 = vand.u32 2147483648, %v3832_v38  ;;  %v1944_v11 = vand.u32 2147483648, %v3776_v23  ;;  %v3883_v3 = vsel %vm2189_vm2, %v2176_v29, 0.0 }
 0x287   :  { %v3877_v56 = vpop.xlane.xlu1 %1571  ;;  %vm1845_vm12 = vcmp.eq.f32.partialorder %v3756_v45, 0.0  ;;  %v1994_v26 = vsel %vm1992_vm7, %v1993_v37, %v1991_v27  ;;  %vm2025_vm13 = vcmp.eq.f32.partialorder %v3700_v62, inf  ;;  %vm1943_vm14 = vcmp.eq.f32.partialorder %v3776_v23, 0.0 }
 0x288   :  { %2612 = vrsqrt.f32 %v3877_v56  ;;  %v1849_v34 = vmul.f32 %v2603_v6, %v3794_v12  ;;  %v2028_v10 = vand.u32 2147483648, %v3700_v62  ;;  %v1945_v1 = vsel %vm1943_vm14, %v1944_v11, %v1942_v41 }
 0x289   :  { %2614 = vrsqrt.f32 %v3732_v50  ;;  %v2165_v13 = vmax.f32 %v2133_v40, 0.0  ;;  %v2102_v58 = vsub.f32 %v3600_v59, %v1938_v2  ;;  %v2014_v8 = vand.u32 2147483648, %v3732_v50 }
 0x28a   :  { %v2605_v33 = vpop.eup %2604  ;;  %2616 = vrsqrt.f32 %v3874_v55  ;;  %v2110_v23 = vsub.f32 %v3720_v60, %v1994_v26  ;;  %vm1948_vm15 = vcmp.eq.f32.partialorder %v3823_v7, inf  ;;  %v1951_v44 = vand.u32 2147483648, %v3823_v7 }
 0x28b   :  { %v2607_v61 = vpop.eup %2606  ;;  %v1947_v54 = vmul.f32 %v2605_v33, %v3823_v7  ;;  %v3897_v32 = vpop.xlane.xlu1 %1575  ;;  %vm2027_vm0 = vcmp.eq.f32.partialorder %v3700_v62, 0.0  ;;  %v2103_v21 = vsub.f32 %v3516_v20, %v1945_v1  ;;  %vm1950_vm1 = vcmp.eq.f32.partialorder %v3823_v7, 0.0 }
 0x28c   :  { %2618 = vrsqrt.f32 %v3897_v32  ;;  %v3911_v60 = vsel %vm1850_vm9, %v3794_v12, %v1849_v34  ;;  %v2024_v37 = vmul.f32 %v2607_v61, %v3700_v62  ;;  %v2205_v43 = vsel %vm2189_vm2, %v2165_v13, 0.0 }
 0x28d   :  { %2620 = vrsqrt.f32 %v3802_v9  ;;  %v1949_v59 = vsel %vm1948_vm15, %v3823_v7, %v1947_v54  ;;  %v2134_v20 = vadd.f32 1.0, %v2102_v58  ;;  %v3920_v7 = vadd.f32 1.0, %v2110_v23 }
 0x28e   :  { %v2609_v47 = vpop.eup %2608  ;;  %2622 = vrsqrt.f32 %v3758_v0  ;;  %v1952_v36 = vsel %vm1950_vm1, %v1951_v44, %v1949_v59  ;;  %vm1955_vm3 = vcmp.eq.f32.partialorder %v3849_v28, inf  ;;  %v1958_v35 = vand.u32 2147483648, %v3849_v28 }
 0x28f   :  { %v2104_v22 = vsub.f32 %v3565_v5, %v1952_v36  ;;  %v1954_v51 = vmul.f32 %v2609_v47, %v3849_v28  ;;  %v3918_v29 = vpop.xlane.xlu1 %1579  ;;  %v2611_v27 = vpop.eup %2610  ;;  %vm2011_vm4 = vcmp.eq.f32.partialorder %v3732_v50, inf  ;;  %v2035_v31 = vand.u32 2147483648, %v3758_v0 }
 0x290   :  { %2624 = vrsqrt.f32 %v3918_v29  ;;  %v2135_v6 = vadd.f32 1.0, %v2103_v21  ;;  %vm1957_vm5 = vcmp.eq.f32.partialorder %v3849_v28, 0.0  ;;  %v2206_v41 = vadd.f32 %v2205_v43, %v3694_v16 }
 0x291   :  { %v1956_v5 = vsel %vm1955_vm3, %v3849_v28, %v1954_v51  ;;  %v2026_v2 = vsel %vm2025_vm13, %v3700_v62, %v2024_v37  ;;  %v3937_v26 = vsel %vm1845_vm12, %v1846_v4, %v1844_v49  ;;  %v2166_v34 = vmax.f32 %v2134_v20, 0.0 }
 0x292   :  { %v2613_v40 = vpop.eup %2612  ;;  %v1959_v11 = vsel %vm1957_vm5, %v1958_v35, %v1956_v5  ;;  %v2136_v1 = vadd.f32 1.0, %v2104_v22  ;;  %v2174_v58 = vmax.f32 %v3920_v7, 0.0  ;;  %vm1962_vm6 = vcmp.eq.f32.partialorder %v3877_v56, inf }
 0x293   :  { %v2615_v33 = vpop.eup %2614  ;;  %v2105_v61 = vsub.f32 %v3631_v46, %v1959_v11  ;;  %v1961_v28 = vmul.f32 %v2613_v40, %v3877_v56  ;;  %v3941_v13 = vpop.xlane.xlu1 %1615  ;;  %v1965_v54 = vand.u32 2147483648, %v3877_v56  ;;  %vm2013_vm7 = vcmp.eq.f32.partialorder %v3732_v50, 0.0 }
 0x294   :  { %v3943_v16 = vpop.eup %2616  ;;  %2626 = vrsqrt.f32 %v3941_v13  ;;  %v2167_v45 = vmax.f32 %v2135_v6, 0.0  ;;  %vm1964_vm8 = vcmp.eq.f32.partialorder %v3877_v56, 0.0  ;;  %v3953_v23 = vmul.f32 %v2611_v27, %v3832_v38 }
 0x295   :  { %v2137_v4 = vadd.f32 1.0, %v2105_v61  ;;  %v1963_v46 = vsel %vm1962_vm6, %v3877_v56, %v1961_v28  ;;  %v3957_v44 = vsel %vm2027_vm0, %v2028_v10, %v2026_v2  ;;  %v2010_v21 = vmul.f32 %v2615_v33, %v3732_v50 }
 0x296   :  { %v2619_v49 = vpop.eup %2618  ;;  %v1966_v59 = vsel %vm1964_vm8, %v1965_v54, %v1963_v46  ;;  %v2207_v37 = vsel %vm2189_vm2, %v2166_v34, 0.0  ;;  %vm2018_vm9 = vcmp.eq.f32.partialorder %v3802_v9, inf  ;;  %v2168_v36 = vmax.f32 %v2136_v1, 0.0 }
 0x297   :  { %v2621_v47 = vpop.eup %2620  ;;  %v2106_v43 = vsub.f32 %v3668_v30, %v1966_v59  ;;  %v1968_v56 = vmul.f32 %v2619_v49, %v3897_v32  ;;  %v3964_v20 = vpop.xlane.xlu1 %1619  ;;  %vm1969_vm10 = vcmp.eq.f32.partialorder %v3897_v32, inf  ;;  %vm1971_vm11 = vcmp.eq.f32.partialorder %v3897_v32, 0.0 }
 0x298   :  { %v2623_v22 = vpop.eup %2622  ;;  %v1972_v62 = vand.u32 2147483648, %v3897_v32  ;;  %2628 = vrsqrt.f32 %v3964_v20  ;;  %vm1852_vm12 = vcmp.eq.f32.partialorder %v3794_v12, 0.0  ;;  %vm1857_vm13 = vcmp.eq.f32.partialorder %v3832_v38, inf }
 0x299   :  { %v2209_v10 = vsel %vm2189_vm2, %v2167_v45, 0.0  ;;  %v2169_v30 = vmax.f32 %v2137_v4, 0.0  ;;  %v2138_v51 = vadd.f32 1.0, %v2106_v43  ;;  %v1970_v35 = vsel %vm1969_vm10, %v3897_v32, %v1968_v56 }
 0x29a   :  { %v2625_v27 = vpop.eup %2624  ;;  %v2208_v6 = vadd.f32 %v2207_v37, %v2206_v41  ;;  %v2012_v5 = vsel %vm2011_vm4, %v3732_v50, %v2010_v21  ;;  %vm2032_vm14 = vcmp.eq.f32.partialorder %v3758_v0, inf  ;;  %v2017_v40 = vmul.f32 %v2621_v47, %v3802_v9 }
 0x29b   :  { %vm2020_vm15 = vcmp.eq.f32.partialorder %v3802_v9, 0.0  ;;  %v1973_v2 = vsel %vm1971_vm11, %v1972_v62, %v1970_v35  ;;  %v2211_v11 = vsel %vm2189_vm2, %v2168_v36, 0.0  ;;  %v2170_v33 = vmax.f32 %v2138_v51, 0.0  ;;  %v3983_v1 = vpop.xlane.xlu1 %1623 }
 0x29c   :  { %v2107_v34 = vsub.f32 %v3609_v57, %v1973_v2  ;;  %v1975_v32 = vmul.f32 %v2625_v27, %v3918_v29  ;;  %v2210_v41 = vadd.f32 %v2209_v10, %v2208_v6  ;;  %vm1976_vm0 = vcmp.eq.f32.partialorder %v3918_v29, inf }
 0x29d   :  { %v1979_v61 = vand.u32 2147483648, %v3918_v29  ;;  %2630 = vrsqrt.f32 %v3983_v1  ;;  %vm2034_vm1 = vcmp.eq.f32.partialorder %v3758_v0, 0.0  ;;  %v2213_v28 = vsel %vm2189_vm2, %v2169_v30, 0.0 }
 0x29e   :  { %v2139_v54 = vadd.f32 1.0, %v2107_v34  ;;  %v1977_v45 = vsel %vm1976_vm0, %v3918_v29, %v1975_v32  ;;  %vm1978_vm3 = vcmp.eq.f32.partialorder %v3918_v29, 0.0  ;;  %v2627_v57 = vpop.eup %2626  ;;  %v2115_v4 = vsub.f32 %v3727_v17, %v3957_v44 }
 0x29f   :  { %v2015_v46 = vsel %vm2013_vm7, %v2014_v8, %v2012_v5  ;;  %v2212_v49 = vadd.f32 %v2211_v11, %v2210_v41  ;;  %v1980_v21 = vsel %vm1978_vm3, %v1979_v61, %v1977_v45  ;;  %v2031_v59 = vmul.f32 %v2623_v22, %v3758_v0  ;;  %v4001_v43 = vpop.xlane.xlu1 %1627 }
 0x2a0   :  { %v2215_v47 = vsel %vm2189_vm2, %v2170_v33, 0.0  ;;  %v2171_v37 = vmax.f32 %v2139_v54, 0.0  ;;  %v2108_v36 = vsub.f32 %v3650_v39, %v1980_v21  ;;  %v2019_v17 = vsel %vm2018_vm9, %v3802_v9, %v2017_v40 }
 0x2a1   :  { %v2021_v29 = vand.u32 2147483648, %v3802_v9  ;;  %v2214_v44 = vadd.f32 %v2213_v28, %v2212_v49  ;;  %2632 = vrsqrt.f32 %v4001_v43  ;;  %v2113_v50 = vsub.f32 %v3740_v19, %v2015_v46 }
 0x2a2   :  { %v2217_v8 = vsel %vm2189_vm2, %v2171_v37, 0.0  ;;  %v2140_v56 = vadd.f32 1.0, %v2108_v36  ;;  %v2038_v22 = vmul.f32 %v2627_v57, %v3941_v13  ;;  %v2629_v62 = vpop.eup %2628  ;;  %v2223_v39 = vsel %vm2189_vm2, %v2174_v58, 0.0 }
 0x2a3   :  { %v2216_v10 = vadd.f32 %v2215_v47, %v2214_v44  ;;  %v4019_v30 = vsel %vm1852_vm12, %v1853_v48, %v3911_v60  ;;  %v4025_v19 = vsel %vm1857_vm13, %v3832_v38, %v3953_v23  ;;  %v4027_v51 = vadd.f32 1.0, %v2115_v4  ;;  %v4034_v27 = vpop.xlane.xlu1 %1631 }
 0x2a4   :  { %v2033_v7 = vsel %vm2032_vm14, %v3758_v0, %v2031_v59  ;;  %v2022_v58 = vsel %vm2020_vm15, %v2021_v29, %v2019_v17  ;;  %v2172_v35 = vmax.f32 %v2140_v56, 0.0  ;;  %vm2039_vm4 = vcmp.eq.f32.partialorder %v3941_v13, inf }
 0x2a5   :  { %v2218_v12 = vadd.f32 %v2217_v8, %v2216_v10  ;;  %v2045_v48 = vmul.f32 %v2629_v62, %v3964_v20  ;;  %2634 = vrsqrt.f32 %v4034_v27  ;;  %v4041_v60 = vmul.f32 %v3943_v16, %v3874_v55 }
 0x2a6   :  { %v2145_v23 = vadd.f32 1.0, %v2113_v50  ;;  %v2219_v6 = vsel %vm2189_vm2, %v2172_v35, 0.0  ;;  %v2040_v9 = vsel %vm2039_vm4, %v3941_v13, %v2038_v22  ;;  %v2036_v40 = vsel %vm2034_vm1, %v2035_v31, %v2033_v7 }
 0x2a7   :  { %v2631_v5 = vpop.eup %2630  ;;  %v2114_v2 = vsub.f32 %v3786_v63, %v2022_v58  ;;  %v2220_v11 = vadd.f32 %v2219_v6, %v2218_v12  ;;  %v2042_v33 = vand.u32 2147483648, %v3941_v13  ;;  %v2179_v34 = vmax.f32 %v4027_v51, 0.0  ;;  %v4055_v32 = vpop.xlane.xlu1 %1635 }
 0x2a8   :  { %vm2041_vm5 = vcmp.eq.f32.partialorder %v3941_v13, 0.0  ;;  %vm2046_vm6 = vcmp.eq.f32.partialorder %v3964_v20, inf  ;;  %v2052_v16 = vmul.f32 %v2631_v5, %v3983_v1  ;;  %2636 = vrsqrt.f32 %v4055_v32 }
 0x2a9   :  { %v2222_v41 = vadd.f32 %v3863_v24, %v2220_v11  ;;  %v2043_v61 = vsel %vm2041_vm5, %v2042_v33, %v2040_v9  ;;  %v2047_v0 = vsel %vm2046_vm6, %v3964_v20, %v2045_v48  ;;  %v2177_v63 = vmax.f32 %v2145_v23, 0.0 }
 0x2aa   :  { %v2116_v31 = vsub.f32 %v3747_v15, %v2036_v40  ;;  %v2049_v28 = vand.u32 2147483648, %v3964_v20  ;;  %vm2053_vm7 = vcmp.eq.f32.partialorder %v3983_v1, inf  ;;  %v2146_v54 = vadd.f32 1.0, %v2114_v2 }
 0x2ab   :  { %v2633_v13 = vpop.eup %2632  ;;  %v2224_v45 = vadd.f32 %v2223_v39, %v2222_v41  ;;  %vm2048_vm8 = vcmp.eq.f32.partialorder %v3964_v20, 0.0  ;;  %v2054_v57 = vsel %vm2053_vm7, %v3983_v1, %v2052_v16  ;;  %v2117_v24 = vsub.f32 %v3798_v53, %v2043_v61  ;;  %v4068_v21 = vpop.xlane.xlu1 %1639 }
 0x2ac   :  { %v2050_v4 = vsel %vm2048_vm8, %v2049_v28, %v2047_v0  ;;  %v2056_v46 = vand.u32 2147483648, %v3983_v1  ;;  %v2059_v49 = vmul.f32 %v2633_v13, %v4001_v43  ;;  %vm2055_vm9 = vcmp.eq.f32.partialorder %v3983_v1, 0.0 }
 0x2ad   :  { %v2226_v15 = vadd.f32 %v3841_v18, %v2224_v45  ;;  %vm2060_vm10 = vcmp.eq.f32.partialorder %v4001_v43, inf  ;;  %2638 = vrsqrt.f32 %v4068_v21  ;;  %vm1859_vm11 = vcmp.eq.f32.partialorder %v3832_v38, 0.0 }
 0x2ae   :  { %v2148_v20 = vadd.f32 1.0, %v2116_v31  ;;  %v2057_v59 = vsel %vm2055_vm9, %v2056_v46, %v2054_v57  ;;  %v2061_v53 = vsel %vm2060_vm10, %v4001_v43, %v2059_v49  ;;  %v2063_v47 = vand.u32 2147483648, %v4001_v43 }
 0x2af   :  { %v2635_v37 = vpop.eup %2634  ;;  %v2178_v36 = vmax.f32 %v2146_v54, 0.0  ;;  %v2118_v17 = vsub.f32 %v3819_v52, %v2050_v4  ;;  %vm2062_vm12 = vcmp.eq.f32.partialorder %v4001_v43, 0.0  ;;  %v2228_v18 = vadd.f32 %v3883_v3, %v2226_v15  ;;  %v4082_v8 = vpop.xlane.xlu1 %1643 }
 0x2b0   :  { %v2229_v1 = vsel %vm2189_vm2, %v2177_v63, 0.0  ;;  %v2149_v29 = vadd.f32 1.0, %v2117_v24  ;;  %v2064_v44 = vsel %vm2062_vm12, %v2063_v47, %v2061_v53  ;;  %v2066_v50 = vmul.f32 %v2635_v37, %v4034_v27 }
 0x2b1   :  { %v2119_v56 = vsub.f32 %v3845_v14, %v2057_v59  ;;  %vm2067_vm13 = vcmp.eq.f32.partialorder %v4034_v27, inf  ;;  %v2070_v22 = vand.u32 2147483648, %v4034_v27  ;;  %2640 = vrsqrt.f32 %v4082_v8 }
 0x2b2   :  { %vm1864_vm14 = vcmp.eq.f32.partialorder %v3874_v55, inf  ;;  %v2180_v52 = vmax.f32 %v2148_v20, 0.0  ;;  %v2068_v3 = vsel %vm2067_vm13, %v4034_v27, %v2066_v50  ;;  %vm2069_vm15 = vcmp.eq.f32.partialorder %v4034_v27, 0.0  ;;  %v2637_v62 = vpop.eup %2636 }
 0x2b3   :  { %v2230_v43 = vadd.f32 %v2229_v1, %v2228_v18  ;;  %v2231_v39 = vsel %vm2189_vm2, %v2178_v36, 0.0  ;;  %v2150_v10 = vadd.f32 1.0, %v2118_v17  ;;  %v2071_v51 = vsel %vm2069_vm15, %v2070_v22, %v2068_v3 }
 0x2b4   :  { %v2120_v14 = vsub.f32 %v3857_v42, %v2064_v44  ;;  %v2233_v7 = vsel %vm2189_vm2, %v2179_v34, 0.0  ;;  %v2181_v58 = vmax.f32 %v2149_v29, 0.0  ;;  %v2073_v35 = vmul.f32 %v2637_v62, %v4055_v32 }
 0x2b5   :  { %v2232_v12 = vadd.f32 %v2231_v39, %v2230_v43  ;;  %vm2074_vm0 = vcmp.eq.f32.partialorder %v4055_v32, inf  ;;  %v2077_v48 = vand.u32 2147483648, %v4055_v32  ;;  %v2121_v27 = vsub.f32 %v3937_v26, %v2071_v51 }
 0x2b6   :  { %v2151_v23 = vadd.f32 1.0, %v2119_v56  ;;  %v2075_v6 = vsel %vm2074_vm0, %v4055_v32, %v2073_v35  ;;  %vm2076_vm1 = vcmp.eq.f32.partialorder %v4055_v32, 0.0  ;;  %v1861_v42 = vsel %vm1859_vm11, %v1860_v25, %v4025_v19 }
 0x2b7   :  { %vm1866_vm3 = vcmp.eq.f32.partialorder %v3874_v55, 0.0  ;;  %v2234_v9 = vadd.f32 %v2233_v7, %v2232_v12  ;;  %v2639_v5 = vpop.eup %2638  ;;  %v2235_v40 = vsel %vm2189_vm2, %v2180_v52, 0.0  ;;  %v2182_v2 = vmax.f32 %v2150_v10, 0.0 }
 0x2b8   :  { %v2078_v11 = vsel %vm2076_vm1, %v2077_v48, %v2075_v6  ;;  %v2152_v26 = vadd.f32 1.0, %v2120_v14  ;;  %v2080_v33 = vmul.f32 %v2639_v5, %v4068_v21  ;;  %v2237_v32 = vsel %vm2189_vm2, %v2181_v58, 0.0 }
 0x2b9   :  { %v2122_v34 = vsub.f32 %v4019_v30, %v2078_v11  ;;  %v2236_v16 = vadd.f32 %v2235_v40, %v2234_v9  ;;  %vm2081_vm4 = vcmp.eq.f32.partialorder %v4068_v21, inf  ;;  %v2084_v38 = vand.u32 2147483648, %v4068_v21 }
 0x2ba   :  { %v2153_v25 = vadd.f32 1.0, %v2121_v27  ;;  %v2183_v19 = vmax.f32 %v2151_v23, 0.0  ;;  %v1865_v41 = vsel %vm1864_vm14, %v3874_v55, %v4041_v60  ;;  %v2082_v61 = vsel %vm2081_vm4, %v4068_v21, %v2080_v33 }
 0x2bb   :  { %vm2083_vm5 = vcmp.eq.f32.partialorder %v4068_v21, 0.0  ;;  %v2238_v0 = vadd.f32 %v2237_v32, %v2236_v16  ;;  %v2641_v30 = vpop.eup %2640  ;;  %v2154_v31 = vadd.f32 1.0, %v2122_v34  ;;  %v2184_v28 = vmax.f32 %v2152_v26, 0.0 }
 0x2bc   :  { %v2085_v63 = vsel %vm2083_vm5, %v2084_v38, %v2082_v61  ;;  %v2239_v13 = vsel %vm2189_vm2, %v2182_v2, 0.0  ;;  %v2087_v54 = vmul.f32 %v2641_v30, %v4082_v8  ;;  %v1867_v45 = vand.u32 2147483648, %v3874_v55 }
 0x2bd   :  { %v2123_v57 = vsub.f32 %v1861_v42, %v2085_v63  ;;  %v2240_v24 = vadd.f32 %v2239_v13, %v2238_v0  ;;  %vm2088_vm6 = vcmp.eq.f32.partialorder %v4082_v8, inf  ;;  %v2091_v60 = vand.u32 2147483648, %v4082_v8 }
 0x2be   :  { %v2185_v4 = vmax.f32 %v2153_v25, 0.0  ;;  %v2241_v46 = vsel %vm2189_vm2, %v2183_v19, 0.0  ;;  %v2089_v49 = vsel %vm2088_vm6, %v4082_v8, %v2087_v54  ;;  %vm2090_vm7 = vcmp.eq.f32.partialorder %v4082_v8, 0.0 }
 0x2bf   :  { %v2155_v21 = vadd.f32 1.0, %v2123_v57  ;;  %v2242_v15 = vadd.f32 %v2241_v46, %v2240_v24  ;;  %v1868_v20 = vsel %vm1866_vm3, %v1867_v45, %v1865_v41  ;;  %v2092_v59 = vsel %vm2090_vm7, %v2091_v60, %v2089_v49 }
 0x2c0   :  { %v2186_v53 = vmax.f32 %v2154_v31, 0.0  ;;  %v2243_v47 = vsel %vm2189_vm2, %v2184_v28, 0.0  ;;  %v2124_v37 = vsub.f32 %v1868_v20, %v2092_v59  ;;  %v2245_v18 = vsel %vm2189_vm2, %v2185_v4, 0.0 }
 0x2c1   :  { %v2244_v36 = vadd.f32 %v2243_v47, %v2242_v15  ;;  %v2187_v17 = vmax.f32 %v2155_v21, 0.0 }
 0x2c2   :  { %v2156_v1 = vadd.f32 1.0, %v2124_v37  ;;  %v2247_v44 = vsel %vm2189_vm2, %v2186_v53, 0.0 }
 0x2c3   :  { %v2246_v29 = vadd.f32 %v2245_v18, %v2244_v36  ;;  %v2249_v56 = vsel %vm2189_vm2, %v2187_v17, 0.0 }
 0x2c4   :  { %v2188_v50 = vmax.f32 %v2156_v1, 0.0 }
 0x2c5   :  { %v2248_v8 = vadd.f32 %v2247_v44, %v2246_v29 }
 0x2c6   :  { %v2251_v55 = vsel %vm2189_vm2, %v2188_v50, 0.0 }
 0x2c7   :  { %v2250_v22 = vadd.f32 %v2249_v56, %v2248_v8 }
 0x2c9   :  { %v2252_v52 = vadd.f32 %v2251_v55, %v2250_v22 }
 0x2cb   :  { %2253 = vadd.xlane.f32.xlu0 %v2252_v52 }
 0x358   :  { %v2254_v3 = vpop.xlane.xlu0 %2253 }
 0x359   :  { %v2255_v43 = vrot.slane %v2254_v3, 4 }
 0x35b   :  { %v2256_v62 = vadd.f32 %v2255_v43, %v2254_v3 }
 0x35d   :  { %v2257_v39 = vrot.slane %v2256_v62, 2 }
 0x35f   :  { %v2258_v10 = vadd.f32 %v2257_v39, %v2256_v62 }
 0x361   :  { %v2259_v51 = vrot.slane %v2258_v10, 1 }
 0x363   :  { %v2260_v14 = vadd.f32 %v2259_v51, %v2258_v10 }
 0x365   :  { %2472 = vpush %v2260_v14 }
 0x396   :  { %s2473_s9 = spop %2472 }
 0x397   :  { %v2262_v7 = vstv %s2473_s9 }
 0x398   :  { %2263 = vst [vmem:[#allocation7] sm:$0xff] %v2262_v7 }
 0x399   :  { %2697 = shalt.err (!%p2694_p6)
}
 0x39a   :  { %s2698_s13 = scalar_lea.hbm %s4147_s2, 128 }
 0x39b   :  { %p2699_p7 = scmp.ne.s32.totalorder %s4147_s2, %s2698_s13  ;;  %p2702_p8 = scmp.lt.u32.totalorder %s2698_s13, %s4147_s2 }
 0x39d   :  { %p2704_p9 = pnand %p2702_p8, %p2699_p7 }
 0x39f   :  { %2707 = shalt.err (!%p2704_p9)
}
 0x3a0   :  { %2273 = dma.vmem_to_hbm [thread:$0]  %s2271_s8, 128, %s4147_s2, [#allocation4]  }
 0x3a1   :  { %2712 = dma.done.wait [#allocation4], 128  }
 0x3a2   :  { %2713 = vsyncadd [#allocation4], 4294967168 }
 0x3a3   :  { %2277 = vsyncpa [#allocation3], 1 }
 0x3a4   :  { %2278 = vsyncpa [#allocation6], 1 }
 0x3a5   :  { %2279 = vsyncpa [#allocation4], 1 }

</bundles_post_ra>
